<compile_context>
chip_gen: v5e
topology: v5e:2x2
jax: 0.10.0
libtpu: 0.0.40
codegen_flags: <defaults>
</compile_context>

<pallas_src>
import functools

import jax
import jax.numpy as jnp
from jax.experimental import pallas as pl
from jax.experimental.pallas import tpu as pltpu


def _make_kernel(A, G, GI, means, stds, pos_iou_thr, neg_lo, neg_hi,
                 min_pos_iou, ignore_iof_thr, num_samples, pos_fraction):
    num_exp_pos = float(int(num_samples * pos_fraction))
    uniform_ms = (len(set(means)) == 1) and (len(set(stds)) == 1)

    def kernel(hw_ref, at_ref, vf_ref, gt_ref, gtt_ref, gtv_ref, ig_ref,
               igv_ref, lab_ref, lw_ref, bt_ref):
        b = pl.program_id(0)
        img_h = hw_ref[b, 0]
        img_w = hw_ref[b, 1]

        at = at_ref[0]                                   # [4, A] coord-major
        axy1 = at[0:2, :]                                # [2, A] (x1, y1)
        axy2 = at[2:4, :]                                # [2, A] (x2, y2)
        a_ctr = (axy1 + axy2) * 0.5                      # [2, A]
        a_wh = axy2 - axy1 + 1.0                         # [2, A] legacy "+1"

        ax1 = at[0:1, :]
        ay1 = at[1:2, :]
        ax2 = at[2:3, :]
        ay2 = at[3:4, :]                                 # [1, A] views
        valid = vf_ref[0] > 0.0                          # [1, A]

        # ---- anchor_inside_flags (allowed_border = 0) ------------------------
        inside = (valid & (ax1 >= 0.0) & (ay1 >= 0.0)
                  & (ax2 < img_w) & (ay2 < img_h))       # [1, A]

        gt = gt_ref[0]                                   # [G, 4]
        gx1 = gt[:, 0:1]
        gy1 = gt[:, 1:2]
        gx2 = gt[:, 2:3]
        gy2 = gt[:, 3:4]                                 # [G, 1]
        gt_valid = gtv_ref[0] > 0.0                      # [G, 1]

        # ---- pairwise IoU (legacy "+1"), [G, A], exact f32 on the VPU --------
        iw = jnp.maximum(jnp.minimum(gx2, ax2) - jnp.maximum(gx1, ax1) + 1.0, 0.0)
        ih = jnp.maximum(jnp.minimum(gy2, ay2) - jnp.maximum(gy1, ay1) + 1.0, 0.0)
        inter = iw * ih                                  # [G, A]
        area_a = a_wh[0:1, :] * a_wh[1:2, :]             # [1, A]
        area_g = (gx2 - gx1 + 1.0) * (gy2 - gy1 + 1.0)   # [G, 1]
        iou = inter / (area_a + area_g - inter)          # [G, A]
        neg_one = jnp.full_like(iou, -1.0)
        iou = jnp.where(gt_valid, iou, neg_one)          # mask padded gts
        iou = jnp.where(inside, iou, neg_one)            # drop outside anchors

        # ---- IoF against ignore regions ---------------------------------------
        ig = ig_ref[0]                                   # [GI, 4]
        ix1 = ig[:, 0:1]
        iy1 = ig[:, 1:2]
        ix2 = ig[:, 2:3]
        iy2 = ig[:, 3:4]
        ig_valid = igv_ref[0] > 0.0                      # [GI, 1]
        iiw = jnp.maximum(jnp.minimum(ix2, ax2) - jnp.maximum(ix1, ax1) + 1.0, 0.0)
        iih = jnp.maximum(jnp.minimum(iy2, ay2) - jnp.maximum(iy1, ay1) + 1.0, 0.0)
        iof = (iiw * iih) / area_a                       # [GI, A]
        iof = jnp.where(ig_valid, iof, jnp.zeros_like(iof))
        ignore_max = jnp.max(iof, axis=0, keepdims=True)  # [1, A]
        iou = jnp.where(ignore_max > ignore_iof_thr, neg_one, iou)

        # ---- MaxIoU assignment -------------------------------------------------
        max_ov = jnp.max(iou, axis=0, keepdims=True)                 # [1, A]
        gidx = jax.lax.broadcasted_iota(jnp.int32, (G, 1), 0)        # [G, 1]
        is_max = iou == max_ov                                       # [G, A]
        argmax_g = jnp.min(jnp.where(is_max, gidx, G),
                           axis=0, keepdims=True)                    # [1, A]

        assigned = jnp.full((1, A), -1, jnp.int32)
        # neg_lo = -1 and ">=" -> ignore-suppressed anchors become negatives
        # (MaxIoUAllNegAssigner behavior).
        assigned = jnp.where((max_ov >= neg_lo) & (max_ov < neg_hi),
                             0, assigned)
        assigned = jnp.where(max_ov >= pos_iou_thr, argmax_g + 1, assigned)

        gt_max = jnp.max(iou, axis=1, keepdims=True)                 # [G, 1]
        force = (iou == gt_max) & (gt_max >= min_pos_iou) & gt_valid  # [G, A]
        forced_idx = jnp.max(jnp.where(force, gidx + 1, 0),
                             axis=0, keepdims=True)                  # [1, A]
        assigned = jnp.where(forced_idx > 0, forced_idx, assigned)

        pos_mask = (assigned > 0) & inside
        neg_mask = (assigned == 0) & inside

        # ---- deterministic stand-in for RandomSampler (first-k by index) ------
        # Single fused Hillis-Steele scan over [2, A]: row 0 = positives,
        # row 1 = negatives (both scans share the roll/compare/select work).
        lane = jax.lax.broadcasted_iota(jnp.int32, (1, A), 1)
        pn = jnp.concatenate([pos_mask.astype(jnp.float32),
                              neg_mask.astype(jnp.float32)], axis=0)  # [2, A]
        shift = 1
        while shift < A:
            rolled = pltpu.roll(pn, shift=shift, axis=1)
            pn = pn + jnp.where(lane >= shift, rolled, 0.0)
            shift *= 2
        cum_pos = pn[0:1, :]
        cum_neg = pn[1:2, :]

        pos_keep = pos_mask & (cum_pos <= num_exp_pos)
        n_pos = jnp.sum(pos_keep.astype(jnp.float32), axis=1, keepdims=True)
        neg_keep = neg_mask & (cum_neg <= (float(num_samples) - n_pos))
        pos_keep_f = pos_keep.astype(jnp.float32)

        # ---- gather the assigned gt box per positive anchor --------------------
        # exact VPU select-accumulate over the G gt boxes (no MXU, no [G,A]
        # one-hot temporary, no bf16 rounding).
        gtt = gtt_ref[0]                                 # [4, G]
        tgt = jnp.zeros((4, A), jnp.float32)
        for g in range(G):
            sel = pos_keep & (assigned == (g + 1))       # [1, A]
            tgt = jnp.where(sel, gtt[:, g:g + 1], tgt)   # [4,1] lane-broadcast

        # ---- bbox2delta (legacy "+1"), paired [2, A] math ----------------------
        t_ctr = (tgt[0:2, :] + tgt[2:4, :]) * 0.5        # [2, A]
        t_wh = tgt[2:4, :] - tgt[0:2, :] + 1.0           # [2, A]
        raw_xy = (t_ctr - a_ctr) / a_wh                  # [2, A]
        raw_wh = jnp.log(t_wh / a_wh)                    # [2, A]
        if uniform_ms:
            deltas = (jnp.concatenate([raw_xy, raw_wh], axis=0)
                      - means[0]) * (1.0 / stds[0])      # [4, A]
        else:
            dx = (raw_xy[0:1, :] - means[0]) * (1.0 / stds[0])
            dy = (raw_xy[1:2, :] - means[1]) * (1.0 / stds[1])
            dw = (raw_wh[0:1, :] - means[2]) * (1.0 / stds[2])
            dh = (raw_wh[1:2, :] - means[3]) * (1.0 / stds[3])
            deltas = jnp.concatenate([dx, dy, dw, dh], axis=0)

        # ---- coalesced stores ---------------------------------------------------
        lab_ref[0] = pos_keep.astype(jnp.int32)
        lw_ref[0] = (pos_keep | neg_keep).astype(jnp.float32)  # pos_weight=-1 -> 1
        bt_ref[0] = deltas * pos_keep_f

    return kernel


@functools.partial(jax.jit, static_argnames=("target_means", "target_stds",
                                             "coord_major_bbox"))
def anchor_target_pallas(anchors, valid_flags, gt_bboxes, gt_valid,
                         gt_bboxes_ignore, ignore_valid, img_hw,
                         target_means=(0.0, 0.0, 0.0, 0.0),
                         target_stds=(1.0, 1.0, 1.0, 1.0),
                         coord_major_bbox=False):
    """Flat (already level-concatenated) anchor-target computation.

    anchors:          [A, 4] (shared anchor grid, standard RPN) or [B, A, 4]
    valid_flags:      [B, A]
    gt_bboxes:        [B, G, 4] padded, gt_valid: [B, G]
    gt_bboxes_ignore: [B, GI, 4] padded, ignore_valid: [B, GI]
    img_hw:           [B, 2] (img_h, img_w)
    coord_major_bbox: if True, bbox_targets / bbox_weights are returned in the
                      lane-dense coordinate-major [B, 4, A] layout (no extra
                      HBM transpose round trip).
    Returns (labels, label_weights, bbox_targets, bbox_weights,
             num_total_pos, num_total_neg); per-level splitting of the outputs
    (images_to_levels) is pure reshaping glue and is left out.
    """
    shared_anchors = anchors.ndim == 2
    A0 = anchors.shape[0] if shared_anchors else anchors.shape[1]
    B = valid_flags.shape[0]
    G = gt_bboxes.shape[1]
    GI = gt_bboxes_ignore.shape[1]

    # Pad anchor axis to a multiple of 128 for lane-dense, unmasked vld/vst.
    A = ((A0 + 127) // 128) * 128
    pad = A - A0

    anchors_f = anchors.astype(jnp.float32)
    if shared_anchors:
        anchors_f = anchors_f[None]                      # [1, A0, 4]
    vf_flat = valid_flags.astype(jnp.float32)
    if pad:
        anchors_f = jnp.pad(anchors_f, ((0, 0), (0, pad), (0, 0)))
        vf_flat = jnp.pad(vf_flat, ((0, 0), (0, pad)))   # padded anchors invalid

    anchors_t = jnp.transpose(anchors_f, (0, 2, 1))      # [1 or B, 4, A]
    vf = vf_flat.reshape(B, 1, A)
    gt = gt_bboxes.astype(jnp.float32)                   # [B, G, 4]
    gt_t = jnp.transpose(gt, (0, 2, 1))                  # [B, 4, G]
    gtv = gt_valid.reshape(B, G, 1).astype(jnp.float32)
    ig = gt_bboxes_ignore.astype(jnp.float32)            # [B, GI, 4]
    igv = ignore_valid.reshape(B, GI, 1).astype(jnp.float32)

    kernel = _make_kernel(
        A, G, GI, tuple(target_means), tuple(target_stds),
        pos_iou_thr=0.7, neg_lo=-1.0, neg_hi=0.3, min_pos_iou=0.3,
        ignore_iof_thr=0.5, num_samples=256, pos_fraction=0.5)

    per_img = lambda b, hw: (b, 0, 0)
    const0 = lambda b, hw: (0, 0, 0)
    # Shared anchor grids stay VMEM-resident across the batch grid.
    anchor_map = const0 if shared_anchors else per_img

    # Rough per-image VMEM footprint with headroom; raises v5e's 16 MiB scoped
    # default, stays well under v7x's 64 MiB physical VMEM at demo/realistic A.
    est = 4 * (2 * (6 * A + 10 * G + 5 * GI) + 2 * 6 * A
               + (4 * G * A + 2 * GI * A + 24 * A))
    vmem_limit = int(min(96 * 2 ** 20, max(32 * 2 ** 20, est)))

    grid_spec = pltpu.PrefetchScalarGridSpec(
        num_scalar_prefetch=1,
        grid=(B,),
        in_specs=[
            pl.BlockSpec((1, 4, A), anchor_map),   # anchors (coordinate-major)
            pl.BlockSpec((1, 1, A), per_img),      # valid flags
            pl.BlockSpec((1, G, 4), per_img),      # gt boxes [G, 4]
            pl.BlockSpec((1, 4, G), per_img),      # gt boxes [4, G] (gather)
            pl.BlockSpec((1, G, 1), per_img),      # gt validity
            pl.BlockSpec((1, GI, 4), per_img),     # ignore boxes
            pl.BlockSpec((1, GI, 1), per_img),     # ignore validity
        ],
        out_specs=[
            pl.BlockSpec((1, 1, A), per_img),      # labels
            pl.BlockSpec((1, 1, A), per_img),      # label weights
            pl.BlockSpec((1, 4, A), per_img),      # bbox targets (coord-major)
        ],
    )

    labels_t, lw_t, bt_t = pl.pallas_call(
        kernel,
        out_shape=(
            jax.ShapeDtypeStruct((B, 1, A), jnp.int32),
            jax.ShapeDtypeStruct((B, 1, A), jnp.float32),
            jax.ShapeDtypeStruct((B, 4, A), jnp.float32),
        ),
        grid_spec=grid_spec,
        compiler_params=pltpu.CompilerParams(
            # Images are independent; megacore sharding on v7x, harmless elsewhere.
            dimension_semantics=("parallel",),
            vmem_limit_bytes=vmem_limit),
    )(img_hw.astype(jnp.float32), anchors_t, vf, gt, gt_t, gtv, ig, igv)

    labels = labels_t.reshape(B, A)[:, :A0]
    label_weights = lw_t.reshape(B, A)[:, :A0]
    pos_f = (labels > 0).astype(jnp.float32)

    if coord_major_bbox:
        bbox_targets = bt_t[:, :, :A0]                                # [B, 4, A]
        bbox_weights = jnp.broadcast_to(pos_f[:, None, :], (B, 4, A0))
    else:
        # PyTorch-parity [B, A, 4] layout (extra transpose round trip).
        bbox_targets = jnp.transpose(bt_t, (0, 2, 1))[:, :A0, :]
        bbox_weights = jnp.broadcast_to(pos_f[:, :, None], (B, A0, 4))

    n_pos = jnp.sum(pos_f, axis=1)                      # per image
    n_neg = jnp.sum(label_weights, axis=1) - n_pos
    num_total_pos = jnp.sum(jnp.maximum(n_pos, 1.0)).astype(jnp.int32)
    num_total_neg = jnp.sum(jnp.maximum(n_neg, 1.0)).astype(jnp.int32)
    return (labels, label_weights, bbox_targets, bbox_weights,
            num_total_pos, num_total_neg)


if __name__ == "__main__":
    key = jax.random.PRNGKey(0)
    B, A, G, GI = 2, 256, 8, 4

    k1, k2, k3, k4, k5 = jax.random.split(key, 5)

    # Shared anchor grid (standard RPN): some anchors spill outside the image so
    # the allowed_border=0 inside-flag logic is exercised.
    ctr = jax.random.uniform(k1, (A, 2), minval=0.0, maxval=128.0)
    sz = jax.random.uniform(k2, (A, 2), minval=8.0, maxval=48.0)
    anchors = jnp.concatenate([ctr - sz / 2.0, ctr + sz / 2.0], axis=-1)
    valid_flags = jnp.ones((B, A), jnp.float32)

    # Ground-truth boxes (padded to G), per-image validity masks.
    gctr = jax.random.uniform(k3, (B, G, 2), minval=16.0, maxval=112.0)
    gsz = jax.random.uniform(k4, (B, G, 2), minval=16.0, maxval=64.0)
    gt = jnp.concatenate([gctr - gsz / 2.0, gctr + gsz / 2.0], axis=-1)
    gt_valid = jnp.array([[1, 1, 1, 1, 1, 0, 0, 0],
                          [1, 1, 1, 0, 0, 0, 0, 0]], jnp.float32)
    gt = gt * gt_valid[..., None]

    # Ignore regions (padded to GI).
    ictr = jax.random.uniform(k5, (B, GI, 2), minval=16.0, maxval=112.0)
    ig = jnp.concatenate([ictr - 10.0, ictr + 10.0], axis=-1)
    ig_valid = jnp.array([[1, 1, 0, 0],
                          [0, 0, 0, 0]], jnp.float32)
    ig = ig * ig_valid[..., None]

    # img_metas -> (img_h, img_w) per image.
    img_hw = jnp.array([[128.0, 128.0],
                        [120.0, 128.0]], jnp.float32)

    out = anchor_target_pallas(anchors, valid_flags, gt, gt_valid,
                               ig, ig_valid, img_hw)
    out = jax.block_until_ready(out)
    print("KERNEL_OK")
</pallas_src>

<mosaic_0001>
module attributes {stable_mosaic.version = 11 : i64} {
  func.func @kernel(%arg0: i32, %arg1: memref<2x2xf32, #tpu.memory_space<smem>>, %arg2: memref<1x4x256xf32, #tpu.memory_space<vmem>>, %arg3: memref<1x1x256xf32, #tpu.memory_space<vmem>>, %arg4: memref<1x8x4xf32, #tpu.memory_space<vmem>>, %arg5: memref<1x4x8xf32, #tpu.memory_space<vmem>>, %arg6: memref<1x8x1xf32, #tpu.memory_space<vmem>>, %arg7: memref<1x4x4xf32, #tpu.memory_space<vmem>>, %arg8: memref<1x4x1xf32, #tpu.memory_space<vmem>>, %arg9: memref<1x1x256xi32, #tpu.memory_space<vmem>>, %arg10: memref<1x1x256xf32, #tpu.memory_space<vmem>>, %arg11: memref<1x4x256xf32, #tpu.memory_space<vmem>>) attributes {dimension_semantics = [#tpu.dimension_semantics<parallel>], iteration_bounds = array<i64: 2>, scalar_prefetch = 1 : i64, scratch_operands = 0 : i64, tpu.core_type = #tpu.core_type<tc>, window_params = [{pipeline_mode = #tpu.pipeline_mode<synchronous>, transform_indices = @transform_0, window_bounds = array<i64: 1, 4, 256>}, {transform_indices = @transform_1, window_bounds = array<i64: 1, 1, 256>}, {transform_indices = @transform_2, window_bounds = array<i64: 1, 8, 4>}, {transform_indices = @transform_3, window_bounds = array<i64: 1, 4, 8>}, {transform_indices = @transform_4, window_bounds = array<i64: 1, 8, 1>}, {transform_indices = @transform_5, window_bounds = array<i64: 1, 4, 4>}, {transform_indices = @transform_6, window_bounds = array<i64: 1, 4, 1>}, {transform_indices = @transform_7, window_bounds = array<i64: 1, 1, 256>}, {transform_indices = @transform_8, window_bounds = array<i64: 1, 1, 256>}, {transform_indices = @transform_9, window_bounds = array<i64: 1, 4, 256>}]} {
    %0 = arith.index_cast %arg0 : i32 to index
    %c0 = arith.constant 0 : index
    %1 = memref.load %arg1[%0, %c0] : memref<2x2xf32, #tpu.memory_space<smem>>
    %2 = arith.index_cast %arg0 : i32 to index
    %c1 = arith.constant 1 : index
    %3 = memref.load %arg1[%2, %c1] : memref<2x2xf32, #tpu.memory_space<smem>>
    %c0_0 = arith.constant 0 : index
    %c0_1 = arith.constant 0 : index
    %c0_2 = arith.constant 0 : index
    %4 = vector.load %arg2[%c0_0, %c0_1, %c0_2] : memref<1x4x256xf32, #tpu.memory_space<vmem>>, vector<1x4x256xf32>
    %5 = vector.shape_cast %4 : vector<1x4x256xf32> to vector<4x256xf32>
    %6 = vector.extract_strided_slice %5 {offsets = [0, 0], sizes = [2, 256], strides = [1, 1]} : vector<4x256xf32> to vector<2x256xf32>
    %7 = vector.extract_strided_slice %5 {offsets = [2, 0], sizes = [2, 256], strides = [1, 1]} : vector<4x256xf32> to vector<2x256xf32>
    %8 = arith.addf %6, %7 : vector<2x256xf32>
    %cst = arith.constant 5.000000e-01 : f32
    %9 = vector.broadcast %cst : f32 to vector<2x256xf32>
    %10 = arith.mulf %8, %9 : vector<2x256xf32>
    %11 = arith.subf %7, %6 : vector<2x256xf32>
    %cst_3 = arith.constant 1.000000e+00 : f32
    %12 = vector.broadcast %cst_3 : f32 to vector<2x256xf32>
    %13 = arith.addf %11, %12 : vector<2x256xf32>
    %14 = vector.extract_strided_slice %5 {offsets = [0, 0], sizes = [1, 256], strides = [1, 1]} : vector<4x256xf32> to vector<1x256xf32>
    %15 = vector.extract_strided_slice %5 {offsets = [1, 0], sizes = [1, 256], strides = [1, 1]} : vector<4x256xf32> to vector<1x256xf32>
    %16 = vector.extract_strided_slice %5 {offsets = [2, 0], sizes = [1, 256], strides = [1, 1]} : vector<4x256xf32> to vector<1x256xf32>
    %17 = vector.extract_strided_slice %5 {offsets = [3, 0], sizes = [1, 256], strides = [1, 1]} : vector<4x256xf32> to vector<1x256xf32>
    %c0_4 = arith.constant 0 : index
    %c0_5 = arith.constant 0 : index
    %c0_6 = arith.constant 0 : index
    %18 = vector.load %arg3[%c0_4, %c0_5, %c0_6] : memref<1x1x256xf32, #tpu.memory_space<vmem>>, vector<1x1x256xf32>
    %19 = vector.shape_cast %18 : vector<1x1x256xf32> to vector<1x256xf32>
    %cst_7 = arith.constant 0.000000e+00 : f32
    %20 = vector.broadcast %cst_7 : f32 to vector<1x256xf32>
    %21 = arith.cmpf ogt, %19, %20 : vector<1x256xf32>
    %cst_8 = arith.constant 0.000000e+00 : f32
    %22 = vector.broadcast %cst_8 : f32 to vector<1x256xf32>
    %23 = arith.cmpf oge, %14, %22 : vector<1x256xf32>
    %24 = arith.andi %21, %23 : vector<1x256xi1>
    %cst_9 = arith.constant 0.000000e+00 : f32
    %25 = vector.broadcast %cst_9 : f32 to vector<1x256xf32>
    %26 = arith.cmpf oge, %15, %25 : vector<1x256xf32>
    %27 = arith.andi %24, %26 : vector<1x256xi1>
    %28 = vector.broadcast %3 : f32 to vector<1x256xf32>
    %29 = arith.cmpf olt, %16, %28 : vector<1x256xf32>
    %30 = arith.andi %27, %29 : vector<1x256xi1>
    %31 = vector.broadcast %1 : f32 to vector<1x256xf32>
    %32 = arith.cmpf olt, %17, %31 : vector<1x256xf32>
    %33 = arith.andi %30, %32 : vector<1x256xi1>
    %c0_10 = arith.constant 0 : index
    %c0_11 = arith.constant 0 : index
    %c0_12 = arith.constant 0 : index
    %34 = vector.load %arg4[%c0_10, %c0_11, %c0_12] : memref<1x8x4xf32, #tpu.memory_space<vmem>>, vector<1x8x4xf32>
    %35 = vector.shape_cast %34 : vector<1x8x4xf32> to vector<8x4xf32>
    %36 = vector.extract_strided_slice %35 {offsets = [0, 0], sizes = [8, 1], strides = [1, 1]} : vector<8x4xf32> to vector<8x1xf32>
    %37 = vector.extract_strided_slice %35 {offsets = [0, 1], sizes = [8, 1], strides = [1, 1]} : vector<8x4xf32> to vector<8x1xf32>
    %38 = vector.extract_strided_slice %35 {offsets = [0, 2], sizes = [8, 1], strides = [1, 1]} : vector<8x4xf32> to vector<8x1xf32>
    %39 = vector.extract_strided_slice %35 {offsets = [0, 3], sizes = [8, 1], strides = [1, 1]} : vector<8x4xf32> to vector<8x1xf32>
    %c0_13 = arith.constant 0 : index
    %c0_14 = arith.constant 0 : index
    %c0_15 = arith.constant 0 : index
    %40 = vector.load %arg6[%c0_13, %c0_14, %c0_15] : memref<1x8x1xf32, #tpu.memory_space<vmem>>, vector<1x8x1xf32>
    %41 = vector.shape_cast %40 : vector<1x8x1xf32> to vector<8x1xf32>
    %cst_16 = arith.constant 0.000000e+00 : f32
    %42 = vector.broadcast %cst_16 : f32 to vector<8x1xf32>
    %43 = arith.cmpf ogt, %41, %42 : vector<8x1xf32>
    %44 = vector.broadcast %38 : vector<8x1xf32> to vector<8x256xf32>
    %45 = vector.broadcast %16 : vector<1x256xf32> to vector<8x256xf32>
    %46 = arith.minimumf %44, %45 : vector<8x256xf32>
    %47 = vector.broadcast %36 : vector<8x1xf32> to vector<8x256xf32>
    %48 = vector.broadcast %14 : vector<1x256xf32> to vector<8x256xf32>
    %49 = arith.maximumf %47, %48 : vector<8x256xf32>
    %50 = arith.subf %46, %49 : vector<8x256xf32>
    %cst_17 = arith.constant 1.000000e+00 : f32
    %51 = vector.broadcast %cst_17 : f32 to vector<8x256xf32>
    %52 = arith.addf %50, %51 : vector<8x256xf32>
    %cst_18 = arith.constant 0.000000e+00 : f32
    %53 = vector.broadcast %cst_18 : f32 to vector<8x256xf32>
    %54 = arith.maximumf %52, %53 : vector<8x256xf32>
    %55 = vector.broadcast %39 : vector<8x1xf32> to vector<8x256xf32>
    %56 = vector.broadcast %17 : vector<1x256xf32> to vector<8x256xf32>
    %57 = arith.minimumf %55, %56 : vector<8x256xf32>
    %58 = vector.broadcast %37 : vector<8x1xf32> to vector<8x256xf32>
    %59 = vector.broadcast %15 : vector<1x256xf32> to vector<8x256xf32>
    %60 = arith.maximumf %58, %59 : vector<8x256xf32>
    %61 = arith.subf %57, %60 : vector<8x256xf32>
    %cst_19 = arith.constant 1.000000e+00 : f32
    %62 = vector.broadcast %cst_19 : f32 to vector<8x256xf32>
    %63 = arith.addf %61, %62 : vector<8x256xf32>
    %cst_20 = arith.constant 0.000000e+00 : f32
    %64 = vector.broadcast %cst_20 : f32 to vector<8x256xf32>
    %65 = arith.maximumf %63, %64 : vector<8x256xf32>
    %66 = arith.mulf %54, %65 : vector<8x256xf32>
    %67 = vector.extract_strided_slice %13 {offsets = [0, 0], sizes = [1, 256], strides = [1, 1]} : vector<2x256xf32> to vector<1x256xf32>
    %68 = vector.extract_strided_slice %13 {offsets = [1, 0], sizes = [1, 256], strides = [1, 1]} : vector<2x256xf32> to vector<1x256xf32>
    %69 = arith.mulf %67, %68 : vector<1x256xf32>
    %70 = arith.subf %38, %36 : vector<8x1xf32>
    %cst_21 = arith.constant 1.000000e+00 : f32
    %71 = vector.broadcast %cst_21 : f32 to vector<8x1xf32>
    %72 = arith.addf %70, %71 : vector<8x1xf32>
    %73 = arith.subf %39, %37 : vector<8x1xf32>
    %cst_22 = arith.constant 1.000000e+00 : f32
    %74 = vector.broadcast %cst_22 : f32 to vector<8x1xf32>
    %75 = arith.addf %73, %74 : vector<8x1xf32>
    %76 = arith.mulf %72, %75 : vector<8x1xf32>
    %77 = vector.broadcast %69 : vector<1x256xf32> to vector<8x256xf32>
    %78 = vector.broadcast %76 : vector<8x1xf32> to vector<8x256xf32>
    %79 = arith.addf %77, %78 : vector<8x256xf32>
    %80 = arith.subf %79, %66 : vector<8x256xf32>
    %81 = arith.divf %66, %80 : vector<8x256xf32>
    %cst_23 = arith.constant -1.000000e+00 : f32
    %82 = vector.broadcast %cst_23 : f32 to vector<8x256xf32>
    %83 = vector.shape_cast %43 : vector<8x1xi1> to vector<8x1xi1>
    %84 = vector.broadcast %83 : vector<8x1xi1> to vector<8x256xi1>
    %85 = arith.select %84, %81, %82 : vector<8x256xi1>, vector<8x256xf32>
    %86 = vector.shape_cast %33 : vector<1x256xi1> to vector<1x256xi1>
    %87 = vector.broadcast %86 : vector<1x256xi1> to vector<8x256xi1>
    %88 = arith.select %87, %85, %82 : vector<8x256xi1>, vector<8x256xf32>
    %c0_24 = arith.constant 0 : index
    %c0_25 = arith.constant 0 : index
    %c0_26 = arith.constant 0 : index
    %89 = vector.load %arg7[%c0_24, %c0_25, %c0_26] : memref<1x4x4xf32, #tpu.memory_space<vmem>>, vector<1x4x4xf32>
    %90 = vector.shape_cast %89 : vector<1x4x4xf32> to vector<4x4xf32>
    %91 = vector.extract_strided_slice %90 {offsets = [0, 0], sizes = [4, 1], strides = [1, 1]} : vector<4x4xf32> to vector<4x1xf32>
    %92 = vector.extract_strided_slice %90 {offsets = [0, 1], sizes = [4, 1], strides = [1, 1]} : vector<4x4xf32> to vector<4x1xf32>
    %93 = vector.extract_strided_slice %90 {offsets = [0, 2], sizes = [4, 1], strides = [1, 1]} : vector<4x4xf32> to vector<4x1xf32>
    %94 = vector.extract_strided_slice %90 {offsets = [0, 3], sizes = [4, 1], strides = [1, 1]} : vector<4x4xf32> to vector<4x1xf32>
    %c0_27 = arith.constant 0 : index
    %c0_28 = arith.constant 0 : index
    %c0_29 = arith.constant 0 : index
    %95 = vector.load %arg8[%c0_27, %c0_28, %c0_29] : memref<1x4x1xf32, #tpu.memory_space<vmem>>, vector<1x4x1xf32>
    %96 = vector.shape_cast %95 : vector<1x4x1xf32> to vector<4x1xf32>
    %cst_30 = arith.constant 0.000000e+00 : f32
    %97 = vector.broadcast %cst_30 : f32 to vector<4x1xf32>
    %98 = arith.cmpf ogt, %96, %97 : vector<4x1xf32>
    %99 = vector.broadcast %93 : vector<4x1xf32> to vector<4x256xf32>
    %100 = vector.broadcast %16 : vector<1x256xf32> to vector<4x256xf32>
    %101 = arith.minimumf %99, %100 : vector<4x256xf32>
    %102 = vector.broadcast %91 : vector<4x1xf32> to vector<4x256xf32>
    %103 = vector.broadcast %14 : vector<1x256xf32> to vector<4x256xf32>
    %104 = arith.maximumf %102, %103 : vector<4x256xf32>
    %105 = arith.subf %101, %104 : vector<4x256xf32>
    %cst_31 = arith.constant 1.000000e+00 : f32
    %106 = vector.broadcast %cst_31 : f32 to vector<4x256xf32>
    %107 = arith.addf %105, %106 : vector<4x256xf32>
    %cst_32 = arith.constant 0.000000e+00 : f32
    %108 = vector.broadcast %cst_32 : f32 to vector<4x256xf32>
    %109 = arith.maximumf %107, %108 : vector<4x256xf32>
    %110 = vector.broadcast %94 : vector<4x1xf32> to vector<4x256xf32>
    %111 = vector.broadcast %17 : vector<1x256xf32> to vector<4x256xf32>
    %112 = arith.minimumf %110, %111 : vector<4x256xf32>
    %113 = vector.broadcast %92 : vector<4x1xf32> to vector<4x256xf32>
    %114 = vector.broadcast %15 : vector<1x256xf32> to vector<4x256xf32>
    %115 = arith.maximumf %113, %114 : vector<4x256xf32>
    %116 = arith.subf %112, %115 : vector<4x256xf32>
    %cst_33 = arith.constant 1.000000e+00 : f32
    %117 = vector.broadcast %cst_33 : f32 to vector<4x256xf32>
    %118 = arith.addf %116, %117 : vector<4x256xf32>
    %cst_34 = arith.constant 0.000000e+00 : f32
    %119 = vector.broadcast %cst_34 : f32 to vector<4x256xf32>
    %120 = arith.maximumf %118, %119 : vector<4x256xf32>
    %121 = arith.mulf %109, %120 : vector<4x256xf32>
    %122 = vector.broadcast %69 : vector<1x256xf32> to vector<4x256xf32>
    %123 = arith.divf %121, %122 : vector<4x256xf32>
    %cst_35 = arith.constant 0.000000e+00 : f32
    %124 = vector.broadcast %cst_35 : f32 to vector<4x256xf32>
    %125 = vector.shape_cast %98 : vector<4x1xi1> to vector<4x1xi1>
    %126 = vector.broadcast %125 : vector<4x1xi1> to vector<4x256xi1>
    %127 = arith.select %126, %123, %124 : vector<4x256xi1>, vector<4x256xf32>
    %cst_36 = arith.constant dense<0xFF800000> : vector<256xf32>
    %128 = vector.multi_reduction <maximumf>, %127, %cst_36 [0] : vector<4x256xf32> to vector<256xf32>
    %129 = vector.shape_cast %128 : vector<256xf32> to vector<1x256xf32>
    %cst_37 = arith.constant 5.000000e-01 : f32
    %130 = vector.broadcast %cst_37 : f32 to vector<1x256xf32>
    %131 = arith.cmpf ogt, %129, %130 : vector<1x256xf32>
    %132 = vector.shape_cast %131 : vector<1x256xi1> to vector<1x256xi1>
    %133 = vector.broadcast %132 : vector<1x256xi1> to vector<8x256xi1>
    %134 = arith.select %133, %82, %88 : vector<8x256xi1>, vector<8x256xf32>
    %cst_38 = arith.constant dense<0xFF800000> : vector<256xf32>
    %135 = vector.multi_reduction <maximumf>, %134, %cst_38 [0] : vector<8x256xf32> to vector<256xf32>
    %136 = vector.shape_cast %135 : vector<256xf32> to vector<1x256xf32>
    %137 = tpu.iota {dimensions = array<i32: 0>} : vector<8x1xi32>
    %138 = vector.broadcast %136 : vector<1x256xf32> to vector<8x256xf32>
    %139 = arith.cmpf oeq, %134, %138 : vector<8x256xf32>
    %c8_i32 = arith.constant 8 : i32
    %140 = vector.shape_cast %137 : vector<8x1xi32> to vector<8x1xi32>
    %141 = vector.broadcast %140 : vector<8x1xi32> to vector<8x256xi32>
    %142 = vector.broadcast %c8_i32 : i32 to vector<8x256xi32>
    %143 = arith.select %139, %141, %142 : vector<8x256xi1>, vector<8x256xi32>
    %cst_39 = arith.constant dense<2147483647> : vector<256xi32>
    %144 = vector.multi_reduction <minsi>, %143, %cst_39 [0] : vector<8x256xi32> to vector<256xi32>
    %145 = vector.shape_cast %144 : vector<256xi32> to vector<1x256xi32>
    %c-1_i32 = arith.constant -1 : i32
    %146 = vector.broadcast %c-1_i32 : i32 to vector<1x256xi32>
    %cst_40 = arith.constant -1.000000e+00 : f32
    %147 = vector.broadcast %cst_40 : f32 to vector<1x256xf32>
    %148 = arith.cmpf oge, %136, %147 : vector<1x256xf32>
    %cst_41 = arith.constant 3.000000e-01 : f32
    %149 = vector.broadcast %cst_41 : f32 to vector<1x256xf32>
    %150 = arith.cmpf olt, %136, %149 : vector<1x256xf32>
    %151 = arith.andi %148, %150 : vector<1x256xi1>
    %c0_i32 = arith.constant 0 : i32
    %152 = vector.broadcast %c0_i32 : i32 to vector<1x256xi32>
    %153 = arith.select %151, %152, %146 : vector<1x256xi1>, vector<1x256xi32>
    %cst_42 = arith.constant 0.699999988 : f32
    %154 = vector.broadcast %cst_42 : f32 to vector<1x256xf32>
    %155 = arith.cmpf oge, %136, %154 : vector<1x256xf32>
    %c1_i32 = arith.constant 1 : i32
    %156 = vector.broadcast %c1_i32 : i32 to vector<1x256xi32>
    %157 = arith.addi %145, %156 : vector<1x256xi32>
    %158 = arith.select %155, %157, %153 : vector<1x256xi1>, vector<1x256xi32>
    %cst_43 = arith.constant dense<0xFF800000> : vector<8xf32>
    %159 = vector.multi_reduction <maximumf>, %134, %cst_43 [1] : vector<8x256xf32> to vector<8xf32>
    %160 = vector.shape_cast %159 : vector<8xf32> to vector<8x1xf32>
    %161 = vector.broadcast %160 : vector<8x1xf32> to vector<8x256xf32>
    %162 = arith.cmpf oeq, %134, %161 : vector<8x256xf32>
    %cst_44 = arith.constant 3.000000e-01 : f32
    %163 = vector.broadcast %cst_44 : f32 to vector<8x1xf32>
    %164 = arith.cmpf oge, %160, %163 : vector<8x1xf32>
    %165 = vector.broadcast %164 : vector<8x1xi1> to vector<8x256xi1>
    %166 = arith.andi %162, %165 : vector<8x256xi1>
    %167 = vector.broadcast %43 : vector<8x1xi1> to vector<8x256xi1>
    %168 = arith.andi %166, %167 : vector<8x256xi1>
    %c1_i32_45 = arith.constant 1 : i32
    %169 = vector.broadcast %c1_i32_45 : i32 to vector<8x1xi32>
    %170 = arith.addi %137, %169 : vector<8x1xi32>
    %c0_i32_46 = arith.constant 0 : i32
    %171 = vector.shape_cast %170 : vector<8x1xi32> to vector<8x1xi32>
    %172 = vector.broadcast %171 : vector<8x1xi32> to vector<8x256xi32>
    %173 = vector.broadcast %c0_i32_46 : i32 to vector<8x256xi32>
    %174 = arith.select %168, %172, %173 : vector<8x256xi1>, vector<8x256xi32>
    %cst_47 = arith.constant dense<-2147483648> : vector<256xi32>
    %175 = vector.multi_reduction <maxsi>, %174, %cst_47 [0] : vector<8x256xi32> to vector<256xi32>
    %176 = vector.shape_cast %175 : vector<256xi32> to vector<1x256xi32>
    %c0_i32_48 = arith.constant 0 : i32
    %177 = vector.broadcast %c0_i32_48 : i32 to vector<1x256xi32>
    %178 = arith.cmpi sgt, %176, %177 : vector<1x256xi32>
    %179 = arith.select %178, %176, %158 : vector<1x256xi1>, vector<1x256xi32>
    %c0_i32_49 = arith.constant 0 : i32
    %180 = vector.broadcast %c0_i32_49 : i32 to vector<1x256xi32>
    %181 = arith.cmpi sgt, %179, %180 : vector<1x256xi32>
    %182 = arith.andi %181, %33 : vector<1x256xi1>
    %c0_i32_50 = arith.constant 0 : i32
    %183 = vector.broadcast %c0_i32_50 : i32 to vector<1x256xi32>
    %184 = arith.cmpi eq, %179, %183 : vector<1x256xi32>
    %185 = arith.andi %184, %33 : vector<1x256xi1>
    %186 = tpu.iota {dimensions = array<i32: 1>} : vector<1x256xi32>
    %187 = arith.extui %182 : vector<1x256xi1> to vector<1x256xi32>
    %188 = arith.sitofp %187 : vector<1x256xi32> to vector<1x256xf32>
    %189 = arith.extui %185 : vector<1x256xi1> to vector<1x256xi32>
    %190 = arith.sitofp %189 : vector<1x256xi32> to vector<1x256xf32>
    %191 = tpu.concatenate %188, %190 in 0 : vector<1x256xf32>, vector<1x256xf32> -> vector<2x256xf32>
    %c1_i32_51 = arith.constant 1 : i32
    %192 = tpu.dynamic_rotate %191 by %c1_i32_51 dim 1 : vector<2x256xf32>, i32 -> vector<2x256xf32>
    %c1_i32_52 = arith.constant 1 : i32
    %193 = vector.broadcast %c1_i32_52 : i32 to vector<1x256xi32>
    %194 = arith.cmpi sge, %186, %193 : vector<1x256xi32>
    %cst_53 = arith.constant 0.000000e+00 : f32
    %195 = vector.shape_cast %194 : vector<1x256xi1> to vector<1x256xi1>
    %196 = vector.broadcast %195 : vector<1x256xi1> to vector<2x256xi1>
    %197 = vector.broadcast %cst_53 : f32 to vector<2x256xf32>
    %198 = arith.select %196, %192, %197 : vector<2x256xi1>, vector<2x256xf32>
    %199 = arith.addf %191, %198 : vector<2x256xf32>
    %c2_i32 = arith.constant 2 : i32
    %200 = tpu.dynamic_rotate %199 by %c2_i32 dim 1 : vector<2x256xf32>, i32 -> vector<2x256xf32>
    %c2_i32_54 = arith.constant 2 : i32
    %201 = vector.broadcast %c2_i32_54 : i32 to vector<1x256xi32>
    %202 = arith.cmpi sge, %186, %201 : vector<1x256xi32>
    %cst_55 = arith.constant 0.000000e+00 : f32
    %203 = vector.shape_cast %202 : vector<1x256xi1> to vector<1x256xi1>
    %204 = vector.broadcast %203 : vector<1x256xi1> to vector<2x256xi1>
    %205 = vector.broadcast %cst_55 : f32 to vector<2x256xf32>
    %206 = arith.select %204, %200, %205 : vector<2x256xi1>, vector<2x256xf32>
    %207 = arith.addf %199, %206 : vector<2x256xf32>
    %c4_i32 = arith.constant 4 : i32
    %208 = tpu.dynamic_rotate %207 by %c4_i32 dim 1 : vector<2x256xf32>, i32 -> vector<2x256xf32>
    %c4_i32_56 = arith.constant 4 : i32
    %209 = vector.broadcast %c4_i32_56 : i32 to vector<1x256xi32>
    %210 = arith.cmpi sge, %186, %209 : vector<1x256xi32>
    %cst_57 = arith.constant 0.000000e+00 : f32
    %211 = vector.shape_cast %210 : vector<1x256xi1> to vector<1x256xi1>
    %212 = vector.broadcast %211 : vector<1x256xi1> to vector<2x256xi1>
    %213 = vector.broadcast %cst_57 : f32 to vector<2x256xf32>
    %214 = arith.select %212, %208, %213 : vector<2x256xi1>, vector<2x256xf32>
    %215 = arith.addf %207, %214 : vector<2x256xf32>
    %c8_i32_58 = arith.constant 8 : i32
    %216 = tpu.dynamic_rotate %215 by %c8_i32_58 dim 1 : vector<2x256xf32>, i32 -> vector<2x256xf32>
    %c8_i32_59 = arith.constant 8 : i32
    %217 = vector.broadcast %c8_i32_59 : i32 to vector<1x256xi32>
    %218 = arith.cmpi sge, %186, %217 : vector<1x256xi32>
    %cst_60 = arith.constant 0.000000e+00 : f32
    %219 = vector.shape_cast %218 : vector<1x256xi1> to vector<1x256xi1>
    %220 = vector.broadcast %219 : vector<1x256xi1> to vector<2x256xi1>
    %221 = vector.broadcast %cst_60 : f32 to vector<2x256xf32>
    %222 = arith.select %220, %216, %221 : vector<2x256xi1>, vector<2x256xf32>
    %223 = arith.addf %215, %222 : vector<2x256xf32>
    %c16_i32 = arith.constant 16 : i32
    %224 = tpu.dynamic_rotate %223 by %c16_i32 dim 1 : vector<2x256xf32>, i32 -> vector<2x256xf32>
    %c16_i32_61 = arith.constant 16 : i32
    %225 = vector.broadcast %c16_i32_61 : i32 to vector<1x256xi32>
    %226 = arith.cmpi sge, %186, %225 : vector<1x256xi32>
    %cst_62 = arith.constant 0.000000e+00 : f32
    %227 = vector.shape_cast %226 : vector<1x256xi1> to vector<1x256xi1>
    %228 = vector.broadcast %227 : vector<1x256xi1> to vector<2x256xi1>
    %229 = vector.broadcast %cst_62 : f32 to vector<2x256xf32>
    %230 = arith.select %228, %224, %229 : vector<2x256xi1>, vector<2x256xf32>
    %231 = arith.addf %223, %230 : vector<2x256xf32>
    %c32_i32 = arith.constant 32 : i32
    %232 = tpu.dynamic_rotate %231 by %c32_i32 dim 1 : vector<2x256xf32>, i32 -> vector<2x256xf32>
    %c32_i32_63 = arith.constant 32 : i32
    %233 = vector.broadcast %c32_i32_63 : i32 to vector<1x256xi32>
    %234 = arith.cmpi sge, %186, %233 : vector<1x256xi32>
    %cst_64 = arith.constant 0.000000e+00 : f32
    %235 = vector.shape_cast %234 : vector<1x256xi1> to vector<1x256xi1>
    %236 = vector.broadcast %235 : vector<1x256xi1> to vector<2x256xi1>
    %237 = vector.broadcast %cst_64 : f32 to vector<2x256xf32>
    %238 = arith.select %236, %232, %237 : vector<2x256xi1>, vector<2x256xf32>
    %239 = arith.addf %231, %238 : vector<2x256xf32>
    %c64_i32 = arith.constant 64 : i32
    %240 = tpu.dynamic_rotate %239 by %c64_i32 dim 1 : vector<2x256xf32>, i32 -> vector<2x256xf32>
    %c64_i32_65 = arith.constant 64 : i32
    %241 = vector.broadcast %c64_i32_65 : i32 to vector<1x256xi32>
    %242 = arith.cmpi sge, %186, %241 : vector<1x256xi32>
    %cst_66 = arith.constant 0.000000e+00 : f32
    %243 = vector.shape_cast %242 : vector<1x256xi1> to vector<1x256xi1>
    %244 = vector.broadcast %243 : vector<1x256xi1> to vector<2x256xi1>
    %245 = vector.broadcast %cst_66 : f32 to vector<2x256xf32>
    %246 = arith.select %244, %240, %245 : vector<2x256xi1>, vector<2x256xf32>
    %247 = arith.addf %239, %246 : vector<2x256xf32>
    %c128_i32 = arith.constant 128 : i32
    %248 = tpu.dynamic_rotate %247 by %c128_i32 dim 1 : vector<2x256xf32>, i32 -> vector<2x256xf32>
    %c128_i32_67 = arith.constant 128 : i32
    %249 = vector.broadcast %c128_i32_67 : i32 to vector<1x256xi32>
    %250 = arith.cmpi sge, %186, %249 : vector<1x256xi32>
    %cst_68 = arith.constant 0.000000e+00 : f32
    %251 = vector.shape_cast %250 : vector<1x256xi1> to vector<1x256xi1>
    %252 = vector.broadcast %251 : vector<1x256xi1> to vector<2x256xi1>
    %253 = vector.broadcast %cst_68 : f32 to vector<2x256xf32>
    %254 = arith.select %252, %248, %253 : vector<2x256xi1>, vector<2x256xf32>
    %255 = arith.addf %247, %254 : vector<2x256xf32>
    %256 = vector.extract_strided_slice %255 {offsets = [0, 0], sizes = [1, 256], strides = [1, 1]} : vector<2x256xf32> to vector<1x256xf32>
    %257 = vector.extract_strided_slice %255 {offsets = [1, 0], sizes = [1, 256], strides = [1, 1]} : vector<2x256xf32> to vector<1x256xf32>
    %cst_69 = arith.constant 1.280000e+02 : f32
    %258 = vector.broadcast %cst_69 : f32 to vector<1x256xf32>
    %259 = arith.cmpf ole, %256, %258 : vector<1x256xf32>
    %260 = arith.andi %182, %259 : vector<1x256xi1>
    %261 = arith.extui %260 : vector<1x256xi1> to vector<1x256xi32>
    %262 = arith.sitofp %261 : vector<1x256xi32> to vector<1x256xf32>
    %cst_70 = arith.constant dense<0.000000e+00> : vector<1xf32>
    %263 = vector.multi_reduction <add>, %262, %cst_70 [1] : vector<1x256xf32> to vector<1xf32>
    %264 = vector.shape_cast %263 : vector<1xf32> to vector<1x1xf32>
    %cst_71 = arith.constant 2.560000e+02 : f32
    %265 = vector.broadcast %cst_71 : f32 to vector<1x1xf32>
    %266 = arith.subf %265, %264 : vector<1x1xf32>
    %267 = vector.broadcast %266 : vector<1x1xf32> to vector<1x256xf32>
    %268 = arith.cmpf ole, %257, %267 : vector<1x256xf32>
    %269 = arith.andi %185, %268 : vector<1x256xi1>
    %270 = arith.extui %260 : vector<1x256xi1> to vector<1x256xi32>
    %271 = arith.sitofp %270 : vector<1x256xi32> to vector<1x256xf32>
    %c0_72 = arith.constant 0 : index
    %c0_73 = arith.constant 0 : index
    %c0_74 = arith.constant 0 : index
    %272 = vector.load %arg5[%c0_72, %c0_73, %c0_74] : memref<1x4x8xf32, #tpu.memory_space<vmem>>, vector<1x4x8xf32>
    %273 = vector.shape_cast %272 : vector<1x4x8xf32> to vector<4x8xf32>
    %cst_75 = arith.constant 0.000000e+00 : f32
    %274 = vector.broadcast %cst_75 : f32 to vector<4x256xf32>
    %c1_i32_76 = arith.constant 1 : i32
    %275 = vector.broadcast %c1_i32_76 : i32 to vector<1x256xi32>
    %276 = arith.cmpi eq, %179, %275 : vector<1x256xi32>
    %277 = arith.andi %260, %276 : vector<1x256xi1>
    %278 = vector.extract_strided_slice %273 {offsets = [0, 0], sizes = [4, 1], strides = [1, 1]} : vector<4x8xf32> to vector<4x1xf32>
    %279 = vector.shape_cast %277 : vector<1x256xi1> to vector<1x256xi1>
    %280 = vector.broadcast %279 : vector<1x256xi1> to vector<4x256xi1>
    %281 = vector.shape_cast %278 : vector<4x1xf32> to vector<4x1xf32>
    %282 = vector.broadcast %281 : vector<4x1xf32> to vector<4x256xf32>
    %283 = arith.select %280, %282, %274 : vector<4x256xi1>, vector<4x256xf32>
    %c2_i32_77 = arith.constant 2 : i32
    %284 = vector.broadcast %c2_i32_77 : i32 to vector<1x256xi32>
    %285 = arith.cmpi eq, %179, %284 : vector<1x256xi32>
    %286 = arith.andi %260, %285 : vector<1x256xi1>
    %287 = vector.extract_strided_slice %273 {offsets = [0, 1], sizes = [4, 1], strides = [1, 1]} : vector<4x8xf32> to vector<4x1xf32>
    %288 = vector.shape_cast %286 : vector<1x256xi1> to vector<1x256xi1>
    %289 = vector.broadcast %288 : vector<1x256xi1> to vector<4x256xi1>
    %290 = vector.shape_cast %287 : vector<4x1xf32> to vector<4x1xf32>
    %291 = vector.broadcast %290 : vector<4x1xf32> to vector<4x256xf32>
    %292 = arith.select %289, %291, %283 : vector<4x256xi1>, vector<4x256xf32>
    %c3_i32 = arith.constant 3 : i32
    %293 = vector.broadcast %c3_i32 : i32 to vector<1x256xi32>
    %294 = arith.cmpi eq, %179, %293 : vector<1x256xi32>
    %295 = arith.andi %260, %294 : vector<1x256xi1>
    %296 = vector.extract_strided_slice %273 {offsets = [0, 2], sizes = [4, 1], strides = [1, 1]} : vector<4x8xf32> to vector<4x1xf32>
    %297 = vector.shape_cast %295 : vector<1x256xi1> to vector<1x256xi1>
    %298 = vector.broadcast %297 : vector<1x256xi1> to vector<4x256xi1>
    %299 = vector.shape_cast %296 : vector<4x1xf32> to vector<4x1xf32>
    %300 = vector.broadcast %299 : vector<4x1xf32> to vector<4x256xf32>
    %301 = arith.select %298, %300, %292 : vector<4x256xi1>, vector<4x256xf32>
    %c4_i32_78 = arith.constant 4 : i32
    %302 = vector.broadcast %c4_i32_78 : i32 to vector<1x256xi32>
    %303 = arith.cmpi eq, %179, %302 : vector<1x256xi32>
    %304 = arith.andi %260, %303 : vector<1x256xi1>
    %305 = vector.extract_strided_slice %273 {offsets = [0, 3], sizes = [4, 1], strides = [1, 1]} : vector<4x8xf32> to vector<4x1xf32>
    %306 = vector.shape_cast %304 : vector<1x256xi1> to vector<1x256xi1>
    %307 = vector.broadcast %306 : vector<1x256xi1> to vector<4x256xi1>
    %308 = vector.shape_cast %305 : vector<4x1xf32> to vector<4x1xf32>
    %309 = vector.broadcast %308 : vector<4x1xf32> to vector<4x256xf32>
    %310 = arith.select %307, %309, %301 : vector<4x256xi1>, vector<4x256xf32>
    %c5_i32 = arith.constant 5 : i32
    %311 = vector.broadcast %c5_i32 : i32 to vector<1x256xi32>
    %312 = arith.cmpi eq, %179, %311 : vector<1x256xi32>
    %313 = arith.andi %260, %312 : vector<1x256xi1>
    %314 = vector.extract_strided_slice %273 {offsets = [0, 4], sizes = [4, 1], strides = [1, 1]} : vector<4x8xf32> to vector<4x1xf32>
    %315 = vector.shape_cast %313 : vector<1x256xi1> to vector<1x256xi1>
    %316 = vector.broadcast %315 : vector<1x256xi1> to vector<4x256xi1>
    %317 = vector.shape_cast %314 : vector<4x1xf32> to vector<4x1xf32>
    %318 = vector.broadcast %317 : vector<4x1xf32> to vector<4x256xf32>
    %319 = arith.select %316, %318, %310 : vector<4x256xi1>, vector<4x256xf32>
    %c6_i32 = arith.constant 6 : i32
    %320 = vector.broadcast %c6_i32 : i32 to vector<1x256xi32>
    %321 = arith.cmpi eq, %179, %320 : vector<1x256xi32>
    %322 = arith.andi %260, %321 : vector<1x256xi1>
    %323 = vector.extract_strided_slice %273 {offsets = [0, 5], sizes = [4, 1], strides = [1, 1]} : vector<4x8xf32> to vector<4x1xf32>
    %324 = vector.shape_cast %322 : vector<1x256xi1> to vector<1x256xi1>
    %325 = vector.broadcast %324 : vector<1x256xi1> to vector<4x256xi1>
    %326 = vector.shape_cast %323 : vector<4x1xf32> to vector<4x1xf32>
    %327 = vector.broadcast %326 : vector<4x1xf32> to vector<4x256xf32>
    %328 = arith.select %325, %327, %319 : vector<4x256xi1>, vector<4x256xf32>
    %c7_i32 = arith.constant 7 : i32
    %329 = vector.broadcast %c7_i32 : i32 to vector<1x256xi32>
    %330 = arith.cmpi eq, %179, %329 : vector<1x256xi32>
    %331 = arith.andi %260, %330 : vector<1x256xi1>
    %332 = vector.extract_strided_slice %273 {offsets = [0, 6], sizes = [4, 1], strides = [1, 1]} : vector<4x8xf32> to vector<4x1xf32>
    %333 = vector.shape_cast %331 : vector<1x256xi1> to vector<1x256xi1>
    %334 = vector.broadcast %333 : vector<1x256xi1> to vector<4x256xi1>
    %335 = vector.shape_cast %332 : vector<4x1xf32> to vector<4x1xf32>
    %336 = vector.broadcast %335 : vector<4x1xf32> to vector<4x256xf32>
    %337 = arith.select %334, %336, %328 : vector<4x256xi1>, vector<4x256xf32>
    %c8_i32_79 = arith.constant 8 : i32
    %338 = vector.broadcast %c8_i32_79 : i32 to vector<1x256xi32>
    %339 = arith.cmpi eq, %179, %338 : vector<1x256xi32>
    %340 = arith.andi %260, %339 : vector<1x256xi1>
    %341 = vector.extract_strided_slice %273 {offsets = [0, 7], sizes = [4, 1], strides = [1, 1]} : vector<4x8xf32> to vector<4x1xf32>
    %342 = vector.shape_cast %340 : vector<1x256xi1> to vector<1x256xi1>
    %343 = vector.broadcast %342 : vector<1x256xi1> to vector<4x256xi1>
    %344 = vector.shape_cast %341 : vector<4x1xf32> to vector<4x1xf32>
    %345 = vector.broadcast %344 : vector<4x1xf32> to vector<4x256xf32>
    %346 = arith.select %343, %345, %337 : vector<4x256xi1>, vector<4x256xf32>
    %347 = vector.extract_strided_slice %346 {offsets = [0, 0], sizes = [2, 256], strides = [1, 1]} : vector<4x256xf32> to vector<2x256xf32>
    %348 = vector.extract_strided_slice %346 {offsets = [2, 0], sizes = [2, 256], strides = [1, 1]} : vector<4x256xf32> to vector<2x256xf32>
    %349 = arith.addf %347, %348 : vector<2x256xf32>
    %cst_80 = arith.constant 5.000000e-01 : f32
    %350 = vector.broadcast %cst_80 : f32 to vector<2x256xf32>
    %351 = arith.mulf %349, %350 : vector<2x256xf32>
    %352 = vector.extract_strided_slice %346 {offsets = [2, 0], sizes = [2, 256], strides = [1, 1]} : vector<4x256xf32> to vector<2x256xf32>
    %353 = vector.extract_strided_slice %346 {offsets = [0, 0], sizes = [2, 256], strides = [1, 1]} : vector<4x256xf32> to vector<2x256xf32>
    %354 = arith.subf %352, %353 : vector<2x256xf32>
    %cst_81 = arith.constant 1.000000e+00 : f32
    %355 = vector.broadcast %cst_81 : f32 to vector<2x256xf32>
    %356 = arith.addf %354, %355 : vector<2x256xf32>
    %357 = arith.subf %351, %10 : vector<2x256xf32>
    %358 = arith.divf %357, %13 : vector<2x256xf32>
    %359 = arith.divf %356, %13 : vector<2x256xf32>
    %360 = math.log %359 : vector<2x256xf32>
    %361 = tpu.concatenate %358, %360 in 0 : vector<2x256xf32>, vector<2x256xf32> -> vector<4x256xf32>
    %cst_82 = arith.constant 0.000000e+00 : f32
    %362 = vector.broadcast %cst_82 : f32 to vector<4x256xf32>
    %363 = arith.subf %361, %362 : vector<4x256xf32>
    %cst_83 = arith.constant 1.000000e+00 : f32
    %364 = vector.broadcast %cst_83 : f32 to vector<4x256xf32>
    %365 = arith.mulf %363, %364 : vector<4x256xf32>
    %366 = arith.extui %260 : vector<1x256xi1> to vector<1x256xi32>
    %c0_84 = arith.constant 0 : index
    %c0_85 = arith.constant 0 : index
    %c0_86 = arith.constant 0 : index
    %367 = vector.load %arg9[%c0_84, %c0_85, %c0_86] : memref<1x1x256xi32, #tpu.memory_space<vmem>>, vector<1x1x256xi32>
    %368 = vector.shape_cast %367 : vector<1x1x256xi32> to vector<1x256xi32>
    %369 = vector.shape_cast %366 : vector<1x256xi32> to vector<1x1x256xi32>
    tpu.vector_store %arg9[%c0_84, %c0_85, %c0_86], %369 {strides = array<i32>} : memref<1x1x256xi32, #tpu.memory_space<vmem>>, vector<1x1x256xi32>,
    %370 = arith.ori %260, %269 : vector<1x256xi1>
    %371 = arith.extui %370 : vector<1x256xi1> to vector<1x256xi32>
    %372 = arith.sitofp %371 : vector<1x256xi32> to vector<1x256xf32>
    %c0_87 = arith.constant 0 : index
    %c0_88 = arith.constant 0 : index
    %c0_89 = arith.constant 0 : index
    %373 = vector.load %arg10[%c0_87, %c0_88, %c0_89] : memref<1x1x256xf32, #tpu.memory_space<vmem>>, vector<1x1x256xf32>
    %374 = vector.shape_cast %373 : vector<1x1x256xf32> to vector<1x256xf32>
    %375 = vector.shape_cast %372 : vector<1x256xf32> to vector<1x1x256xf32>
    tpu.vector_store %arg10[%c0_87, %c0_88, %c0_89], %375 {strides = array<i32>} : memref<1x1x256xf32, #tpu.memory_space<vmem>>, vector<1x1x256xf32>,
    %376 = vector.broadcast %271 : vector<1x256xf32> to vector<4x256xf32>
    %377 = arith.mulf %365, %376 : vector<4x256xf32>
    %c0_90 = arith.constant 0 : index
    %c0_91 = arith.constant 0 : index
    %c0_92 = arith.constant 0 : index
    %378 = vector.load %arg11[%c0_90, %c0_91, %c0_92] : memref<1x4x256xf32, #tpu.memory_space<vmem>>, vector<1x4x256xf32>
    %379 = vector.shape_cast %378 : vector<1x4x256xf32> to vector<4x256xf32>
    %380 = vector.shape_cast %377 : vector<4x256xf32> to vector<1x4x256xf32>
    tpu.vector_store %arg11[%c0_90, %c0_91, %c0_92], %380 {strides = array<i32>} : memref<1x4x256xf32, #tpu.memory_space<vmem>>, vector<1x4x256xf32>,
    return
  }
  func.func @transform_0(%arg0: i32, %arg1: memref<2x2xf32, #tpu.memory_space<smem>>) -> (i32, i32, i32) {
    %c0_i32 = arith.constant 0 : i32
    %c0_i32_0 = arith.constant 0 : i32
    %c0_i32_1 = arith.constant 0 : i32
    %c0_i32_2 = arith.constant 0 : i32
    return %c0_i32, %c0_i32_0, %c0_i32_1 : i32, i32, i32
  }
  func.func @transform_1(%arg0: i32, %arg1: memref<2x2xf32, #tpu.memory_space<smem>>) -> (i32, i32, i32) {
    %c0_i32 = arith.constant 0 : i32
    %c0_i32_0 = arith.constant 0 : i32
    %c0_i32_1 = arith.constant 0 : i32
    return %arg0, %c0_i32, %c0_i32_0 : i32, i32, i32
  }
  func.func @transform_2(%arg0: i32, %arg1: memref<2x2xf32, #tpu.memory_space<smem>>) -> (i32, i32, i32) {
    %c0_i32 = arith.constant 0 : i32
    %c0_i32_0 = arith.constant 0 : i32
    %c0_i32_1 = arith.constant 0 : i32
    return %arg0, %c0_i32, %c0_i32_0 : i32, i32, i32
  }
  func.func @transform_3(%arg0: i32, %arg1: memref<2x2xf32, #tpu.memory_space<smem>>) -> (i32, i32, i32) {
    %c0_i32 = arith.constant 0 : i32
    %c0_i32_0 = arith.constant 0 : i32
    %c0_i32_1 = arith.constant 0 : i32
    return %arg0, %c0_i32, %c0_i32_0 : i32, i32, i32
  }
  func.func @transform_4(%arg0: i32, %arg1: memref<2x2xf32, #tpu.memory_space<smem>>) -> (i32, i32, i32) {
    %c0_i32 = arith.constant 0 : i32
    %c0_i32_0 = arith.constant 0 : i32
    %c0_i32_1 = arith.constant 0 : i32
    return %arg0, %c0_i32, %c0_i32_0 : i32, i32, i32
  }
  func.func @transform_5(%arg0: i32, %arg1: memref<2x2xf32, #tpu.memory_space<smem>>) -> (i32, i32, i32) {
    %c0_i32 = arith.constant 0 : i32
    %c0_i32_0 = arith.constant 0 : i32
    %c0_i32_1 = arith.constant 0 : i32
    return %arg0, %c0_i32, %c0_i32_0 : i32, i32, i32
  }
  func.func @transform_6(%arg0: i32, %arg1: memref<2x2xf32, #tpu.memory_space<smem>>) -> (i32, i32, i32) {
    %c0_i32 = arith.constant 0 : i32
    %c0_i32_0 = arith.constant 0 : i32
    %c0_i32_1 = arith.constant 0 : i32
    return %arg0, %c0_i32, %c0_i32_0 : i32, i32, i32
  }
  func.func @transform_7(%arg0: i32, %arg1: memref<2x2xf32, #tpu.memory_space<smem>>) -> (i32, i32, i32) {
    %c0_i32 = arith.constant 0 : i32
    %c0_i32_0 = arith.constant 0 : i32
    %c0_i32_1 = arith.constant 0 : i32
    return %arg0, %c0_i32, %c0_i32_0 : i32, i32, i32
  }
  func.func @transform_8(%arg0: i32, %arg1: memref<2x2xf32, #tpu.memory_space<smem>>) -> (i32, i32, i32) {
    %c0_i32 = arith.constant 0 : i32
    %c0_i32_0 = arith.constant 0 : i32
    %c0_i32_1 = arith.constant 0 : i32
    return %arg0, %c0_i32, %c0_i32_0 : i32, i32, i32
  }
  func.func @transform_9(%arg0: i32, %arg1: memref<2x2xf32, #tpu.memory_space<smem>>) -> (i32, i32, i32) {
    %c0_i32 = arith.constant 0 : i32
    %c0_i32_0 = arith.constant 0 : i32
    %c0_i32_1 = arith.constant 0 : i32
    return %arg0, %c0_i32, %c0_i32_0 : i32, i32, i32
  }
}

</mosaic_0001>

<bundles_post_ra>
// kernel: anchor_target_pallas.1
= control target key start
LH: loop header
LB: loop body
LE: loop exit
PB: predicated region body
PF: predicated region fallthrough
CT: control target
= control target key end

     0   :  { %s1672_s16 = smov [#allocation3]   ;;  %s2463_s0 = inlined_call_operand.vmem [shape: f32[2,2], index: 0, kind: input, shape index: {}]   ;;  %s2464_s1 = inlined_call_operand.vmem [shape: f32[1,4,256], index: 1, kind: input, shape index: {}]   ;;  %s2465_s2 = inlined_call_operand.vmem [shape: f32[2,1,256], index: 2, kind: input, shape index: {}]   ;;  %s2466_s3 = inlined_call_operand.vmem [shape: f32[2,8,4], index: 3, kind: input, shape index: {}]   ;;  %s2467_s4 = inlined_call_operand.vmem [shape: f32[2,4,8], index: 4, kind: input, shape index: {}]   ;;  %s2468_s5 = inlined_call_operand.vmem [shape: f32[2,8,1], index: 5, kind: input, shape index: {}]   ;;  %s2469_s6 = inlined_call_operand.vmem [shape: f32[2,4,4], index: 6, kind: input, shape index: {}]   ;;  %s2470_s7 = inlined_call_operand.vmem [shape: f32[2,4,1], index: 7, kind: input, shape index: {}]   ;;  %s2471_s8 = inlined_call_operand.vmem [shape: s32[2,1,256], index: 8, kind: output, shape index: {0}]   ;;  %s2472_s9 = inlined_call_operand.vmem [shape: f32[2,1,256], index: 9, kind: output, shape index: {1}]   ;;  %s2473_s10 = inlined_call_operand.hbm [shape: f32[2,4,256], index: 10, kind: output, shape index: {2}]  }
   0x1   :  { %s17_s15 = sshll.u32 %s2463_s0, 4  ;;  %s18_s15 = int_to_ptr.vmem [resolvable:$true] %s17_s15 }
   0x2   :  { %20 = dma.vmem_to_smem %s18_s15, 32, %s1672_s16, [#allocation2] }
   0x3   :  { %1650 = dma.done.wait [#allocation2], 32 }
   0x4   :  { %1651 = vsyncadd [#allocation2], 4294967264 }
   0x5   :  { %23 = sfence }
   0x6   :  { %24 = vsyncpa [#allocation5], 0 }
   0x7   :  { %26 = vsyncpa [#allocation5 + $0x1], 0  ;;  %s1749_s17 = smov 0   ;;  %s1751_s18 = smov 0  }
   0x8   :  { %s1753_s19 = smov 0   ;;  %s1755_s20 = smov 0  }
   0x9 LB: > { %s1770_s0 = sadd.s32 4294967295, %s1670_s20   ;;  %s1464_s21 = sadd.s32 4294967294, %s1670_s20   ;;  %s1670_s20 = sphi %s1755_s20, %s2541_s20   ;;  %s1666_s19 = sphi %s1753_s19, %s2540_s19   ;;  %s1662_s18 = sphi %s1751_s18, %s2539_s18   ;;  %s1658_s17 = sphi %s1749_s17, %s2538_s17  }
   0xa   : > { %s1774_s22 = sadd.s32 1, %s1670_s20   ;;  %s268_s23 = sadd.s32 1, %s1666_s19 }
   0xb   : > { %s265_s24 = ssub.s32 %s1670_s20, %s1774_s22  ;;  %p278_p0 = scmp.ne.s32.totalorder %s1666_s19, %s1662_s18 }
   0xc   : > { %p266_p1 = scmp.eq.s32.totalorder %s265_s24, 0  ;;  %p279_p2 = scmp.eq.s32.totalorder %s1770_s0, 1 }
   0xd   : > { %p284_p3 = scmp.ne.s32.totalorder %s1662_s18, %s1658_s17  ;;  %p285_p4 = scmp.eq.s32.totalorder %s1464_s21, 1 }
   0xe   : > { %s1785_s25 = scalar_select %p266_p1, %s1666_s19, %s268_s23  }
   0xf   : > { %p1787_p5 = por %p279_p2, %p278_p0  ;;  %p1791_p6 = por %p285_p4, %p284_p3 }
  0x10   : > { %p1467_p7 = scmp.ge.s32.totalorder %s1670_s20, 1  ;;  %p348_p8 = scmp.lt.s32.totalorder %s1670_s20, 3 }
  0x12   : > { %p349_p9 = pnand %p1467_p7, %p348_p8 }
  0x13   : > { %p411_p10 = scmp.lt.s32.totalorder (!%p349_p9), %s1770_s0, 1  ;;  %s1673_s13 = smov (!%p349_p9), 2  }
  0x14   : > { %352 = sbr.rel (%p349_p9) target bundleno = 1508 (0x5e4), region = 48  ;;  %s1678_s23 = smov (!%p349_p9), 127  }
  0x19   : > { %s1799_s28 = scalar_select %p411_p10, %s1770_s0, 1  ;;  %v1674_v1 = vmov 2   ;;  %v1675_v2 = vmov 3   ;;  %v1676_v3 = vmov 0   ;;  %v1677_v5 = vmov 1   ;;  %v1835_v15 = vld [vmem:[%s2464_s1] sm:$0xff] }
  0x1a   : > { %1551 = vset.pattern.permute.xlu1 %v1674_v1  ;;  %1555 = vset.pattern.permute.xlu0 %v1674_v1  ;;  %v449_v16 = vrot.slane %v1835_v15, 6  ;;  %v507_v30 = vperm.slane %v1835_v15, 0  ;;  %vm459_vm2 = vcmp.ge.f32.partialorder %v1835_v15, 0.0  ;;  %v495_v31 = vperm.slane %v1835_v15, 2 }
  0x1b   : > { %s1470_s29 = sshll.u32 %s1799_s28, 3  ;;  %1553 = vset.pattern.permute.xlu2 %v1675_v2  ;;  %s1812_s14 = sshll.u32 %s1799_s28, 2  ;;  %v525_v32 = vperm.slane %v1835_v15, 3  ;;  %v537_v33 = vperm.slane %v1835_v15, 1  ;;  %v1870_v34 = vsel %vm459_vm2, 1, %v1676_v3  ;;  %v496_v36 = vperm.slane %v1835_v15, 6 }
  0x1c   : > { %s418_s12 = scalar_lea.vmem %s2466_s3, %s1470_s29  ;;  %s430_s21 = scalar_lea.vmem %s2469_s6, %s1812_s14  ;;  %v455_v17 = vsub.f32 %v1835_v15, %v449_v16  ;;  %v526_v37 = vperm.slane %v1835_v15, 7  ;;  %466 = vst [vmem:[#allocation1] sm:$0xff] %v1870_v34  ;;  %v508_v39 = vperm.slane %v1835_v15, 4  ;;  %v1878_v40 = vperm.slane %v507_v30, 0 }
  0x1d   : > { %v487_v0 = vld [vmem:[%s418_s12] sm:$0xff]  ;;  %s434_s11 = scalar_lea.vmem %s2470_s7, %s1812_s14  ;;  %s426_s16 = scalar_lea.vmem %s2468_s5, %s1470_s29  ;;  %v538_v41 = vperm.slane %v1835_v15, 5  ;;  %v1883_v45 = vperm.slane %v495_v31, 2  ;;  %v1885_v46 = vperm.slane %v525_v32, 3  ;;  %v1887_v47 = vperm.slane %v537_v33, 1 }
  0x1e   : > { %558 = vrot.lane.b32.xlu0 %v487_v0, %s1673_s13  ;;  %492 = vperm.xlu1 %1551, %v487_v0   ;;  %v628_v4 = vld [vmem:[%s430_s21] sm:$0xf]  ;;  %v1843_v19 = vadd.f32 1.0, %v455_v17  ;;  %s1477_s29 = sshll.u32 %s1770_s0, 7  ;;  %v1891_v49 = vperm.slane %v496_v36, 2  ;;  %v1893_v50 = vperm.slane %v526_v37, 3  ;;  %s422_s15 = scalar_lea.vmem %s2467_s4, %s1812_s14 }
  0x1f   : > { %522 = vperm.xlu2 %1553, %v487_v0   ;;  %v629_v9 = vld [vmem:[%s434_s11] sm:$0xf]  ;;  %s445_s24 = sadd.s32 1, %s1477_s29  ;;  %s444_s11 = sld [smem:[#allocation3 + %s1477_s29]]  ;;  %v1902_v56 = vperm.slane %v508_v39, 0  ;;  %v1904_v57 = vperm.slane %v538_v41, 1 }
  0x20   : > { %vm630_vm0 = vcmp.gt.f32.partialorder %v629_v9, 0.0  ;;  %v488_v11 = vld [vmem:[%s426_s16] sm:$0xff]  ;;  %v1478_v20 = vrot.slane %v1843_v19, 9  ;;  %s1862_s30 = sld [smem:[#allocation3 + %s445_s24]]  ;;  %s1965_s12 = sshll.u32 %s1799_s28, 1  ;;  %vm2474_vm14 = vcmask 1043456  }
  0x21   : > { %v700_v10 = vsel %vm630_vm0, 1, %v1676_v3  ;;  %vm489_vm1 = vcmp.gt.f32.partialorder %v488_v11, 0.0  ;;  %vm2475_vm15 = vcmask 1040384   ;;  %s414_s21 = scalar_lea.vmem %s2465_s2, %s1965_s12  ;;  %s1681_s28 = smov 1  }
  0x22   : > { %v614_v12 = vsel %vm489_vm1, 1, %v1676_v3  ;;  %v557_v23 = vmul.f32 %v1478_v20, %v1843_v19  ;;  %s1684_s29 = smov 16   ;;  %s1685_s24 = smov 32  }
  0x23   : > { %v1909_v60 = vld [vmem:[#allocation1 + $0x1] ss:$4 sm:$0xff]  ;;  %s1686_s16 = smov 64  }
  0x24   : > { %v569_v24 = vperm.slane %v557_v23, 2  ;;  %v570_v25 = vperm.slane %v557_v23, 6  ;;  %vm469_vm2 = vcmp.ne.s32.totalorder %v1909_v60, 0 }
  0x26   : > { %1552 = vset.pattern.permute.xlu1 %v1676_v3  ;;  %v1851_v26 = vperm.slane %v569_v24, 2  ;;  %v1856_v29 = vperm.slane %v570_v25, 2  ;;  %v471_v55 = vstv %s1862_s30 }
  0x27   : > { %504 = vperm.xlu1 %1552, %v487_v0   ;;  %1554 = vset.pattern.permute.xlu2 %v1677_v5  ;;  %vm472_vm3 = vcmp.lt.f32.partialorder %v1835_v15, %v471_v55 }
  0x28   : > { %534 = vperm.xlu2 %1554, %v487_v0   ;;  %1574 = vrcp.f32 %v1851_v26  ;;  %v473_v61 = vsel %vm472_vm3, 1, %v1676_v3  ;;  %vm675_vm4 = vweird.f32 %v1851_v26  ;;  %v679_v20 = vand.u32 2147483647, %v1851_v26 }
  0x29   : > { %1576 = vrcp.f32 %v1856_v29  ;;  %474 = vst [vmem:[#allocation1] sm:$0xff] %v473_v61  ;;  %vm690_vm8 = vweird.f32 %v1856_v29  ;;  %v696_v36 = vand.u32 2147483648, %v1856_v29  ;;  %v694_v41 = vand.u32 2147483647, %v1856_v29 }
  0x2a   : > { %vm680_vm10 = vcmp.eq.f32.partialorder %v679_v20, 8.507059e+37 }
  0x2b   : > { %vm695_vm12 = vcmp.eq.f32.partialorder %v694_v41, 8.507059e+37 }
  0x2e   : > { %v1872_v35 = vpop.eup %1574 }
  0x2f   : > { %639 = vperm.xlu1 %1552, %v628_v4   ;;  %v1881_v44 = vpop.eup %1576  ;;  %v671_v48 = vmul.f32 %v1872_v35, %v1851_v26  ;;  %vm676_vm5 = vweird.f32 %v1872_v35 }
  0x30   : > { %1556 = vset.pattern.permute.xlu2 %v1675_v2  ;;  %v686_v58 = vmul.f32 %v1881_v44, %v1856_v29  ;;  %v1924_v23 = vld [vmem:[#allocation1 + $0x2] ss:$4 sm:$0xff]  ;;  %vm1927_vm7 = vmor %vm675_vm4, %vm676_vm5  ;;  %vm691_vm9 = vweird.f32 %v1881_v44 }
  0x31   : > { %651 = vperm.xlu2 %1556, %v628_v4   ;;  %v672_v59 = vsub.f32 1.0, %v671_v48  ;;  %vm1949_vm11 = vmor %vm690_vm8, %vm691_vm9  ;;  %vm477_vm4 = vcmp.ne.s32.totalorder %v1924_v23, 0 }
  0x37   : > { %1557 = vset.pattern.permute.xlu1 %v1677_v5 }
  0x38   : > { %657 = vperm.xlu1 %1557, %v628_v4  }
  0x39   : > { %1558 = vset.pattern.permute.xlu2 %v1674_v1 }
  0x40   : > { %1560 = vset.pattern.permute.xlu1 %v1676_v3 }
  0x41   : > { %616 = vperm.xlu1 %1560, %v614_v12   ;;  %v479_v12 = vstv %s444_s11 }
  0x42   : > { %vm480_vm6 = vcmp.lt.f32.partialorder %v1835_v15, %v479_v12 }
  0x43   : > { %v481_v24 = vsel %vm480_vm6, 1, %v1676_v3 }
  0x44   : > { %482 = vst [vmem:[#allocation1] sm:$0xff] %v481_v24 }
  0x79   : > { %v1846_v21 = vpop.permute.xlu2 %522 }
  0x82   : > { %v1853_v27 = vpop.permute.xlu2 %534 }
  0x8b   : > { %v652_v38 = vpop.permute.xlu2 %651 }
  0x8c   : > { %v654_v52 = vmin.f32 %v652_v38, %v1885_v46  ;;  %v655_v63 = vmin.f32 %v652_v38, %v1893_v50 }
  0x90   : > { %v559_v6 = vpop.permute.xlu0 %558  ;;  %v1841_v18 = vpop.permute.xlu1 %492 }
  0x91   : > { %v561_v7 = vsub.f32 %v487_v0, %v559_v6  ;;  %v687_v6 = vsub.f32 1.0, %v686_v58  ;;  %v501_v31 = vmin.f32 %v1841_v18, %v1883_v45  ;;  %v502_v37 = vmin.f32 %v1841_v18, %v1891_v49 }
  0x93   : > { %v562_v8 = vadd.f32 1.0, %v561_v7  ;;  %v673_v7 = vmul.f32 %v1872_v35, %v672_v59 }
  0x95   : > { %564 = vrot.lane.b32.xlu0 %v562_v8, %s1678_s23  ;;  %v674_v17 = vadd.f32 %v1872_v35, %v673_v7  ;;  %s1682_s23 = smov 4  }
  0x99   : > { %v1848_v22 = vpop.permute.xlu1 %504 }
  0x9a   : > { %v514_v48 = vmax.f32 %v1848_v22, %v1902_v56 }
  0x9d   : > { %633 = vperm.xlu0 %1555, %v628_v4  }
  0xa1   : > { %v640_v28 = vpop.permute.xlu1 %639 }
  0xa2   : > { %v642_v51 = vmax.f32 %v640_v28, %v1878_v40  ;;  %v643_v62 = vmax.f32 %v640_v28, %v1902_v56 }
  0xa5   : > { %1559 = vset.pattern.permute.xlu0 %v1676_v3 }
  0xa6   : > { %702 = vperm.xlu0 %1559, %v700_v10  }
  0xaa   : > { %v658_v42 = vpop.permute.xlu1 %657 }
  0xab   : > { %v660_v53 = vmax.f32 %v658_v42, %v1887_v47  ;;  %v661_v0 = vmax.f32 %v658_v42, %v1904_v57  ;;  %v531_v42 = vmin.f32 %v1846_v21, %v1885_v46  ;;  %v543_v46 = vmax.f32 %v1853_v27, %v1887_v47 }
  0xac   : > { %v516_v47 = vsub.f32 %v502_v37, %v514_v48 }
  0xad   : > { %v662_v4 = vsub.f32 %v654_v52, %v660_v53  ;;  %v697_v53 = vor.u32 1.1754944e-38, %v696_v36  ;;  %v545_v58 = vsub.f32 %v531_v42, %v543_v46 }
  0xae   : > { %1566 = vset.pattern.permute.xlu0 %v1677_v5 }
  0xaf   : > { %v664_v10 = vadd.f32 1.0, %v662_v4 }
  0xb1   : > { %v666_v32 = vmax.f32 %v664_v10, 0.0 }
 0x107   : > { %v565_v13 = vpop.permute.xlu0 %564 }
 0x108   : > { %v567_v14 = vmul.f32 %v565_v13, %v562_v8  ;;  %v663_v8 = vsub.f32 %v655_v63, %v661_v0  ;;  %v681_v13 = vand.u32 2147483648, %v1851_v26 }
 0x10a   : > { %577 = vperm.xlu2 %1558, %v567_v14   ;;  %v688_v14 = vmul.f32 %v1881_v44, %v687_v6  ;;  %v665_v25 = vadd.f32 1.0, %v663_v8  ;;  %v682_v38 = vor.u32 1.1754944e-38, %v681_v13 }
 0x10c   : > { %v689_v39 = vadd.f32 %v1881_v44, %v688_v14 }
 0x10e   : > { %v693_v55 = vsel %vm1949_vm11, %v1881_v44, %v689_v39 }
 0x10f   : > { %v634_v43 = vpop.permute.xlu0 %633 }
 0x110   : > { %v636_v54 = vmin.f32 %v634_v43, %v1883_v45  ;;  %v678_v45 = vsel %vm1927_vm7, %v1872_v35, %v674_v17  ;;  %v544_v35 = vmax.f32 %v1853_v27, %v1904_v57  ;;  %v547_v57 = vadd.f32 1.0, %v545_v58 }
 0x112   : > { %1568 = vset.pattern.permute.xlu2 %v1675_v2  ;;  %v637_v2 = vmin.f32 %v634_v43, %v1891_v49  ;;  %v644_v5 = vsub.f32 %v636_v54, %v642_v51  ;;  %v513_v43 = vmax.f32 %v1848_v22, %v1878_v40  ;;  %v667_v49 = vmax.f32 %v665_v25, 0.0 }
 0x113   : > { %v532_v40 = vmin.f32 %v1846_v21, %v1893_v50  ;;  %v683_v54 = vsel %vm680_vm10, %v682_v38, %v678_v45  ;;  %v698_v21 = vsel %vm695_vm12, %v697_v53, %v693_v55  ;;  %v518_v50 = vadd.f32 1.0, %v516_v47 }
 0x114   : > { %v645_v9 = vsub.f32 %v637_v2, %v643_v62  ;;  %v646_v11 = vadd.f32 1.0, %v644_v5  ;;  %v515_v56 = vsub.f32 %v501_v31, %v513_v43  ;;  %v461_v2 = vrot.slane %v1870_v34, 3 }
 0x115   : > { %v546_v61 = vsub.f32 %v532_v40, %v544_v35  ;;  %v520_v7 = vmax.f32 %v518_v50, 0.0  ;;  %v549_v8 = vmax.f32 %v547_v57, 0.0 }
 0x116   : > { %v647_v28 = vadd.f32 1.0, %v645_v9  ;;  %v648_v33 = vmax.f32 %v646_v11, 0.0  ;;  %v517_v27 = vadd.f32 1.0, %v515_v56  ;;  %v463_v10 = vsel %vm2475_vm15, %v1870_v34, %v461_v2  ;;  %v457_v11 = vld [vmem:[%s414_s21] sm:$0x3] }
 0x117   : > { %v548_v0 = vadd.f32 1.0, %v546_v61  ;;  %vm464_vm0 = vcmp.ne.s32.totalorder %v463_v10, 0  ;;  %vm458_vm1 = vcmp.gt.f32.partialorder %v457_v11, 0.0 }
 0x118   : > { %v649_v51 = vmax.f32 %v647_v28, 0.0  ;;  %v668_v52 = vmul.f32 %v666_v32, %v648_v33  ;;  %v703_v22 = vpop.permute.xlu0 %702  ;;  %v519_v4 = vmax.f32 %v517_v27, 0.0  ;;  %vm465_vm3 = vmand %vm458_vm1, %vm464_vm0  ;;  %v484_v33 = vld [vmem:[#allocation1 + $0x3] ss:$4 sm:$0xff] }
 0x119   : > { %vm704_vm13 = vcmp.eq.s32.totalorder %v703_v22, 1  ;;  %v550_v9 = vmax.f32 %v548_v0, 0.0  ;;  %vm470_vm5 = vmand %vm465_vm3, %vm469_vm2  ;;  %vm485_vm6 = vcmp.ne.s32.totalorder %v484_v33, 0 }
 0x11a   : > { %v669_v59 = vmul.f32 %v667_v49, %v649_v51  ;;  %v684_v62 = vmul.f32 %v683_v54, %v668_v52  ;;  %v551_v17 = vmul.f32 %v549_v8, %v519_v4  ;;  %vm478_vm7 = vmand %vm470_vm5, %vm477_vm4  ;;  %v1983_v52 = vpop.permute.xlu1 %616 }
 0x11b   : > { %v552_v20 = vmul.f32 %v550_v9, %v520_v7  ;;  %vm486_vm8 = vmand %vm478_vm7, %vm485_vm6  ;;  %vm618_vm3 = vcmp.eq.s32.totalorder %v1983_v52, 1 }
 0x11c   : > { %v699_v63 = vmul.f32 %v698_v21, %v669_v59  ;;  %v705_v44 = vsel %vm704_vm13, %v684_v62, 0.0  ;;  %v1981_v48 = vsel %vm486_vm8, 1, %v1676_v3 }
 0x11d   : > { %v708_v6 = vsel %vm2474_vm14, %v705_v44, -inf  ;;  %v622_v54 = vperm.slane %v1981_v48, 0  ;;  %v623_v56 = vperm.slane %v1981_v48, 1 }
 0x11e   : > { %v706_v5 = vsel %vm704_vm13, %v699_v63, 0.0  ;;  %v709_v12 = vrot.slane %v708_v6, 4 }
 0x11f   : > { %v715_v13 = vsel %vm2474_vm14, %v706_v5, -inf  ;;  %vm624_vm4 = vcmp.eq.s32.totalorder %v622_v54, 1  ;;  %vm625_vm5 = vcmp.eq.s32.totalorder %v623_v56, 1 }
 0x120   : > { %v716_v28 = vrot.slane %v715_v13, 4  ;;  %v710_v30 = vmax.f32 %v708_v6, %v709_v12 }
 0x122   : > { %v717_v34 = vmax.f32 %v715_v13, %v716_v28  ;;  %v711_v36 = vrot.slane %v710_v30, 2 }
 0x164   : > { %v578_v14 = vpop.permute.xlu2 %577 }
 0x165   : > { %v580_v24 = vadd.f32 %v578_v14, %v1851_v26  ;;  %v581_v25 = vadd.f32 %v578_v14, %v1856_v29  ;;  %v718_v26 = vrot.slane %v717_v34, 2  ;;  %v712_v29 = vmax.f32 %v710_v30, %v711_v36 }
 0x167   : > { %v582_v31 = vsub.f32 %v580_v24, %v551_v17  ;;  %v583_v32 = vsub.f32 %v581_v25, %v552_v20  ;;  %v719_v42 = vmax.f32 %v717_v34, %v718_v26  ;;  %v713_v43 = vrot.slane %v712_v29, 1 }
 0x168   : > { %v742_v24 = vlaneseq }
 0x169   : > { %1578 = vrcp.f32 %v582_v31  ;;  %v595_v18 = vand.u32 2147483648, %v582_v31  ;;  %v593_v46 = vand.u32 2147483647, %v582_v31  ;;  %v610_v49 = vand.u32 2147483648, %v583_v32 }
 0x16a   : > { %1580 = vrcp.f32 %v583_v32  ;;  %v608_v40 = vand.u32 2147483647, %v583_v32  ;;  %v720_v35 = vrot.slane %v719_v42, 1  ;;  %vm589_vm11 = vweird.f32 %v582_v31 }
 0x16b   : > { %v596_v55 = vor.u32 1.1754944e-38, %v595_v18  ;;  %vm604_vm13 = vweird.f32 %v583_v32  ;;  %v714_v47 = vmax.f32 %v712_v29, %v713_v43  ;;  %vm594_vm0 = vcmp.eq.f32.partialorder %v593_v46, 8.507059e+37 }
 0x16c   : > { %v611_v59 = vor.u32 1.1754944e-38, %v610_v49  ;;  %vm609_vm2 = vcmp.eq.f32.partialorder %v608_v40, 8.507059e+37  ;;  %v721_v21 = vmax.f32 %v719_v42, %v720_v35  ;;  %v743_v30 = vshrl.u32 %v742_v24, 7 }
 0x16d   : > { %vm722_vm6 = vcmp.gt.f32.partialorder %v714_v47, 0.5 }
 0x16e   : > { %vm723_vm7 = vcmp.gt.f32.partialorder %v721_v21, 0.5 }
 0x16f   : > { %v1579_v37 = vpop.eup %1578 }
 0x170   : > { %v1581_v38 = vpop.eup %1580  ;;  %v585_v39 = vmul.f32 %v1579_v37, %v582_v31  ;;  %vm590_vm9 = vweird.f32 %v1579_v37 }
 0x171   : > { %v600_v41 = vmul.f32 %v1581_v38, %v583_v32  ;;  %vm605_vm10 = vweird.f32 %v1581_v38  ;;  %vm591_vm12 = vmor %vm589_vm11, %vm590_vm9 }
 0x172   : > { %v586_v60 = vsub.f32 1.0, %v585_v39  ;;  %vm606_vm1 = vmor %vm604_vm13, %vm605_vm10 }
 0x173   : > { %v601_v45 = vsub.f32 1.0, %v600_v41 }
 0x174   : > { %v587_v23 = vmul.f32 %v1579_v37, %v586_v60 }
 0x175   : > { %v602_v51 = vmul.f32 %v1581_v38, %v601_v45 }
 0x176   : > { %v588_v53 = vadd.f32 %v1579_v37, %v587_v23 }
 0x177   : > { %v603_v22 = vadd.f32 %v1581_v38, %v602_v51 }
 0x178   : > { %v592_v58 = vsel %vm591_vm12, %v1579_v37, %v588_v53 }
 0x179   : > { %v597_v61 = vsel %vm594_vm0, %v596_v55, %v592_v58  ;;  %v607_v62 = vsel %vm606_vm1, %v1581_v38, %v603_v22  ;;  %v792_v38 = vadd.s32 1, %v743_v30 }
 0x17a   : > { %v598_v27 = vmul.f32 %v597_v61, %v551_v17  ;;  %v612_v50 = vsel %vm609_vm2, %v611_v59, %v607_v62  ;;  %v1679_v62 = vmov 4294967295  }
 0x17b   : > { %v613_v57 = vmul.f32 %v612_v50, %v552_v20 }
 0x17c   : > { %v619_v63 = vsel %vm618_vm3, %v598_v27, -1.0 }
 0x17d   : > { %v620_v0 = vsel %vm618_vm3, %v613_v57, -1.0  ;;  %v626_v44 = vsel %vm624_vm4, %v619_v63, -1.0 }
 0x17e   : > { %v627_v2 = vsel %vm625_vm5, %v620_v0, -1.0  ;;  %v728_v4 = vsel %vm722_vm6, -1.0, %v626_v44 }
 0x17f   : > { %v729_v5 = vsel %vm723_vm7, -1.0, %v627_v2  ;;  %v730_v7 = vrot.slane %v728_v4, 4 }
 0x180   : > { %v780_v6 = vmax.f32 %v728_v4, %v729_v5  ;;  %v736_v8 = vrot.slane %v729_v5, 4 }
 0x181   : > { %v731_v9 = vmax.f32 %v728_v4, %v730_v7 }
 0x182   : > { %781 = vmax.xlane.f32.xlu2 %v780_v6  ;;  %v737_v10 = vmax.f32 %v729_v5, %v736_v8 }
 0x183   : > { %v732_v11 = vrot.slane %v731_v9, 2 }
 0x184   : > { %v738_v12 = vrot.slane %v737_v10, 2 }
 0x185   : > { %v733_v13 = vmax.f32 %v731_v9, %v732_v11 }
 0x186   : > { %v739_v14 = vmax.f32 %v737_v10, %v738_v12 }
 0x187   : > { %v734_v17 = vrot.slane %v733_v13, 1 }
 0x188   : > { %v740_v20 = vrot.slane %v739_v14, 1 }
 0x189   : > { %v1997_v25 = vmax.f32 %v733_v13, %v734_v17  ;;  %v2057_v17 = vand.u32 127, %v742_v24 }
 0x18a   : > { %v1999_v28 = vmax.f32 %v739_v14, %v740_v20 }
 0x18b   : > { %vm744_vm8 = vcmp.eq.f32.partialorder %v728_v4, %v1997_v25 }
 0x18c   : > { %vm745_vm9 = vcmp.eq.f32.partialorder %v729_v5, %v1999_v28  ;;  %v746_v31 = vsel %vm744_vm8, %v743_v30, 8 }
 0x18d   : > { %v747_v32 = vsel %vm745_vm9, %v743_v30, 8  ;;  %v748_v34 = vrot.slane %v746_v31, 4 }
 0x18e   : > { %v757_v33 = vrot.slane %v747_v32, 4 }
 0x18f   : > { %vm749_vm10 = vcmp.lt.s32.totalorder %v746_v31, %v748_v34 }
 0x190   : > { %vm758_vm11 = vcmp.lt.s32.totalorder %v747_v32, %v757_v33  ;;  %v750_v36 = vsel %vm749_vm10, %v746_v31, %v748_v34 }
 0x191   : > { %v759_v26 = vsel %vm758_vm11, %v747_v32, %v757_v33  ;;  %v751_v37 = vrot.slane %v750_v36, 2 }
 0x192   : > { %v760_v29 = vrot.slane %v759_v26, 2 }
 0x193   : > { %vm752_vm12 = vcmp.lt.s32.totalorder %v750_v36, %v751_v37 }
 0x194   : > { %vm761_vm13 = vcmp.lt.s32.totalorder %v759_v26, %v760_v29  ;;  %v753_v41 = vsel %vm752_vm12, %v750_v36, %v751_v37  ;;  %vm766_vm12 = vcmp.ge.f32.partialorder %v1997_v25, -1.0 }
 0x195   : > { %v762_v42 = vsel %vm761_vm13, %v759_v26, %v760_v29  ;;  %v754_v60 = vrot.slane %v753_v41, 1  ;;  %vm768_vm13 = vcmp.lt.f32.partialorder %v1997_v25, 0.3 }
 0x196   : > { %v763_v43 = vrot.slane %v762_v42, 1 }
 0x197   : > { %vm755_vm8 = vcmp.lt.s32.totalorder %v753_v41, %v754_v60 }
 0x198   : > { %vm764_vm10 = vcmp.lt.s32.totalorder %v762_v42, %v763_v43  ;;  %v756_v35 = vsel %vm755_vm8, %v753_v41, %v754_v60 }
 0x199   : > { %v765_v53 = vsel %vm764_vm10, %v762_v42, %v763_v43  ;;  %v776_v22 = vadd.s32 1, %v756_v35 }
 0x19a   : > { %v777_v59 = vadd.s32 1, %v765_v53 }
 0x1f5   : > { %v782_v39 = vpop.xlane.xlu2 %781 }
 0x1f6   : > { %vm783_vm0 = vcmp.eq.f32.partialorder %v728_v4, %v782_v39  ;;  %vm784_vm1 = vcmp.eq.f32.partialorder %v729_v5, %v782_v39  ;;  %vm785_vm2 = vcmp.ge.f32.partialorder %v782_v39, 0.3  ;;  %v1680_v5 = vmov 0.0  }
 0x1f7   : > { %vm788_vm4 = vmand %vm783_vm0, %vm785_vm2  ;;  %vm767_vm0 = vcmp.ge.f32.partialorder %v1999_v28, -1.0 }
 0x1f8   : > { %vm789_vm5 = vmand %vm784_vm1, %vm785_vm2  ;;  %vm769_vm1 = vcmp.lt.f32.partialorder %v1999_v28, 0.3 }
 0x1f9   : > { %vm790_vm6 = vmand %vm788_vm4, %vm618_vm3 }
 0x1fa   : > { %vm791_vm7 = vmand %vm789_vm5, %vm618_vm3  ;;  %v793_v45 = vsel %vm790_vm6, %v792_v38, 0  ;;  %vm774_vm6 = vcmp.ge.f32.partialorder %v1997_v25, 0.7 }
 0x1fb   : > { %v794_v18 = vsel %vm791_vm7, %v792_v38, 0  ;;  %v795_v23 = vrot.slane %v793_v45, 4  ;;  %vm770_vm2 = vmand %vm766_vm12, %vm768_vm13  ;;  %vm775_vm7 = vcmp.ge.f32.partialorder %v1999_v28, 0.7  ;;  %vm820_vm13 = vcmp.ne.s32.totalorder %v623_v56, 0 }
 0x1fc   : > { %v804_v46 = vrot.slane %v794_v18, 4  ;;  %vm771_vm5 = vmand %vm767_vm0, %vm769_vm1  ;;  %v772_v21 = vsel %vm770_vm2, 0, %v1679_v62 }
 0x1fd   : > { %vm796_vm9 = vcmp.gt.s32.totalorder %v793_v45, %v795_v23  ;;  %v773_v27 = vsel %vm771_vm5, 0, %v1679_v62  ;;  %v778_v57 = vsel %vm774_vm6, %v776_v22, %v772_v21 }
 0x1fe   : > { %v797_v49 = vsel %vm796_vm9, %v793_v45, %v795_v23  ;;  %vm805_vm11 = vcmp.gt.s32.totalorder %v794_v18, %v804_v46  ;;  %v779_v0 = vsel %vm775_vm7, %v777_v59, %v773_v27  ;;  %v1002_v27 = vld [vmem:[%s422_s15] sm:$0xf] }
 0x1ff   : > { %v798_v51 = vrot.slane %v797_v49, 2  ;;  %v806_v40 = vsel %vm805_vm11, %v794_v18, %v804_v46  ;;  %vm819_vm11 = vcmp.ne.s32.totalorder %v622_v54, 0 }
 0x200   : > { %v807_v52 = vrot.slane %v806_v40, 2 }
 0x201   : > { %vm799_vm3 = vcmp.gt.s32.totalorder %v797_v49, %v798_v51 }
 0x202   : > { %v800_v55 = vsel %vm799_vm3, %v797_v49, %v798_v51  ;;  %vm808_vm4 = vcmp.gt.s32.totalorder %v806_v40, %v807_v52 }
 0x203   : > { %v801_v47 = vrot.slane %v800_v55, 1  ;;  %v809_v58 = vsel %vm808_vm4, %v806_v40, %v807_v52 }
 0x204   : > { %v810_v61 = vrot.slane %v809_v58, 1 }
 0x205   : > { %vm802_vm9 = vcmp.gt.s32.totalorder %v800_v55, %v801_v47 }
 0x206   : > { %v803_v50 = vsel %vm802_vm9, %v800_v55, %v801_v47  ;;  %vm811_vm8 = vcmp.gt.s32.totalorder %v809_v58, %v810_v61  ;;  %vm850_vm9 = vcmp.lt.s32.totalorder %v2057_v17, 1 }
 0x207   : > { %v812_v63 = vsel %vm811_vm8, %v809_v58, %v810_v61  ;;  %vm813_vm10 = vcmp.gt.s32.totalorder %v803_v50, 0  ;;  %vm853_vm8 = vcmp.ge.s32.totalorder %v2057_v17, 1 }
 0x208   : > { %vm814_vm12 = vcmp.gt.s32.totalorder %v812_v63, 0  ;;  %v2016_v44 = vsel %vm813_vm10, %v803_v50, %v778_v57  ;;  %vm867_vm10 = vcmp.lt.s32.totalorder %v2057_v17, 2 }
 0x209   : > { %v2020_v2 = vsel %vm814_vm12, %v812_v63, %v779_v0  ;;  %vm817_vm0 = vcmp.gt.s32.totalorder %v2016_v44, 0  ;;  %vm823_vm1 = vcmp.eq.s32.totalorder %v2016_v44, 0  ;;  %vm884_vm12 = vcmp.lt.s32.totalorder %v2057_v17, 4 }
 0x20a   : > { %vm818_vm3 = vcmp.gt.s32.totalorder %v2020_v2, 0  ;;  %vm2025_vm2 = vmand %vm817_vm0, %vm819_vm11  ;;  %vm824_vm4 = vcmp.eq.s32.totalorder %v2020_v2, 0  ;;  %vm901_vm0 = vcmp.lt.s32.totalorder %v2057_v17, 8  ;;  %vm1100_vm14 = vcmp.eq.s32.totalorder %v2016_v44, 7 }
 0x20b   : > { %vm2030_vm5 = vmand %vm818_vm3, %vm820_vm13  ;;  %v1479_v9 = vsel %vm2025_vm2, 1.0, %v1680_v5  ;;  %vm918_vm3 = vcmp.lt.s32.totalorder %v2057_v17, 16 }
 0x20c   : > { %vm2034_vm6 = vmand %vm823_vm1, %vm819_vm11  ;;  %v1480_v11 = vsel %vm2030_vm5, 1.0, %v1680_v5  ;;  %vm870_vm11 = vcmp.ge.s32.totalorder %v2057_v17, 2  ;;  %vm904_vm1 = vcmp.ge.s32.totalorder %v2057_v17, 8 }
 0x20d   : > { %vm2038_vm7 = vmand %vm824_vm4, %vm820_vm13  ;;  %v1481_v6 = vsel %vm2034_vm6, 1.0, %v1680_v5  ;;  %vm887_vm13 = vcmp.ge.s32.totalorder %v2057_v17, 4  ;;  %vm921_vm4 = vcmp.ge.s32.totalorder %v2057_v17, 16 }
 0x20e   : > { %v1482_v7 = vsel %vm2038_vm7, 1.0, %v1680_v5  ;;  %v840_v8 = vrot.slane %v1481_v6, 7 }
 0x20f   : > { %v841_v10 = vrot.slane %v1482_v7, 7 }
 0x210   : > { %v844_v12 = vsel %vm2475_vm15, %v1479_v9, %v840_v8  ;;  %v1687_v9 = vmov 5  }
 0x211   : > { %v845_v13 = vsel %vm2475_vm15, %v1480_v11, %v841_v10  ;;  %v1688_v10 = vmov 6   ;;  %v1689_v11 = vmov 7  }
 0x212   : > { %v1561_v14 = vpack.i.bf16 %v845_v13, %v844_v12 }
 0x214   : > { %1562 = vrot.lane.b32.xlu1 %v1561_v14, %s1681_s28  ;;  %s438_s28 = scalar_lea.vmem %s2471_s8, %s1965_s12 }
 0x286   : > { %v1563_v20 = vpop.permute.xlu1 %1562 }
 0x287   : > { %v1565_v25 = vunpack.i.h.bf16 %v1563_v20  ;;  %v1564_v28 = vunpack.i.l.bf16 %v1563_v20 }
 0x289   : > { %v851_v30 = vsel %vm850_vm9, %v1564_v28, %v1565_v25  ;;  %v852_v31 = vsel %vm850_vm9, %v1565_v25, %v1564_v28  ;;  %vm935_vm9 = vcmp.lt.s32.totalorder %v2057_v17, 32 }
 0x28a   : > { %v862_v32 = vadd.f32 %v851_v30, %v845_v13  ;;  %v859_v34 = vsel %vm853_vm8, %v852_v31, 0.0  ;;  %vm938_vm8 = vcmp.ge.s32.totalorder %v2057_v17, 32  ;;  %v450_v13 = vrot.slane %v449_v16, 4 }
 0x28b   : > { %v861_v33 = vadd.f32 %v859_v34, %v844_v12  ;;  %v1690_v12 = vmov 4  }
 0x28c   : > { %865 = vrot.lane.b32.xlu1 %v862_v32, %s1673_s13  ;;  %v452_v14 = vadd.f32 %v450_v13, %v1835_v15 }
 0x28d   : > { %863 = vrot.lane.b32.xlu0 %v861_v33, %s1673_s13  ;;  %s1683_s13 = smov 8  }
 0x28e   : > { %v453_v20 = vmul.f32 0.5, %v452_v14 }
 0x290   : > { %1151 = vst [vmem:[#allocation1] ss:$2 sm:$0xff] %v453_v20 }
 0x297   : > { %v2081_v25 = vld.sshfl [vmem:[#allocation1] sm:$0xff pattern:$0x75316420]  ;;  %v2083_v28 = vld.sshfl [vmem:[#allocation1 + $0x8] sm:$0xff pattern:$0x75316420] }
 0x298   : > { %1158 = vst [vmem:[#allocation1] ss:$2 sm:$0xff] %v1843_v19 }
 0x29f   : > { %v1159_v30 = vld.sshfl [vmem:[#allocation1] sm:$0xff pattern:$0x75316420]  ;;  %v1160_v31 = vld.sshfl [vmem:[#allocation1 + $0x8] sm:$0xff pattern:$0x75316420] }
 0x2a0   : > { %1195 = vst [vmem:[#allocation1] ss:$2 sm:$0xff] %v1843_v19  ;;  %v2102_v19 = vrot.slane %v1159_v30, 2 }
 0x2a2   : > { %1582 = vrcp.f32 %v2102_v19 }
 0x2fe   : > { %v866_v36 = vpop.permute.xlu1 %865 }
 0x2ff   : > { %v864_v26 = vpop.permute.xlu0 %863 }
 0x300   : > { %v868_v37 = vsel %vm867_vm10, %v864_v26, %v866_v36  ;;  %v869_v29 = vsel %vm867_vm10, %v866_v36, %v864_v26  ;;  %vm952_vm10 = vcmp.lt.s32.totalorder %v2057_v17, 64 }
 0x301   : > { %v876_v38 = vsel %vm870_vm11, %v869_v29, 0.0  ;;  %v879_v39 = vadd.f32 %v868_v37, %v862_v32  ;;  %vm955_vm11 = vcmp.ge.s32.totalorder %v2057_v17, 64 }
 0x302   : > { %v878_v41 = vadd.f32 %v876_v38, %v861_v33 }
 0x303   : > { %882 = vrot.lane.b32.xlu1 %v879_v39, %s1682_s23 }
 0x304   : > { %880 = vrot.lane.b32.xlu0 %v878_v41, %s1682_s23  ;;  %s408_s23 = sand.u32 1, %s1662_s18  }
 0x305   : > { %s1275_s14 = scalar_lea.sflag [#allocation5], %s408_s23 }
 0x375   : > { %v883_v42 = vpop.permute.xlu1 %882 }
 0x376   : > { %v881_v60 = vpop.permute.xlu0 %880 }
 0x377   : > { %v885_v43 = vsel %vm884_vm12, %v881_v60, %v883_v42  ;;  %v886_v45 = vsel %vm884_vm12, %v883_v42, %v881_v60 }
 0x378   : > { %v893_v18 = vsel %vm887_vm13, %v886_v45, 0.0  ;;  %v896_v23 = vadd.f32 %v885_v43, %v879_v39  ;;  %v2132_v39 = vrot.slane %v1160_v31, 2 }
 0x379   : > { %v895_v46 = vadd.f32 %v893_v18, %v878_v41 }
 0x37a   : > { %899 = vrot.lane.b32.xlu1 %v896_v23, %s1683_s13  ;;  %1584 = vrcp.f32 %v2132_v39 }
 0x37b   : > { %897 = vrot.lane.b32.xlu0 %v895_v46, %s1683_s13  ;;  %s1492_s13 = sshll.u32 %s1770_s0, 3 }
 0x37c   : > { %s1292_s11 = scalar_lea.hbm %s2473_s10, %s1492_s13 }
 0x3ec   : > { %v900_v49 = vpop.permute.xlu1 %899 }
 0x3ed   : > { %v898_v51 = vpop.permute.xlu0 %897 }
 0x3ee   : > { %v902_v40 = vsel %vm901_vm0, %v898_v51, %v900_v49  ;;  %v903_v35 = vsel %vm901_vm0, %v900_v49, %v898_v51  ;;  %vm1003_vm0 = vcmp.eq.s32.totalorder %v2016_v44, 1  ;;  %v2149_v49 = vld.sshfl [vmem:[#allocation1] sm:$0xff pattern:$0x75316420] }
 0x3ef   : > { %v910_v52 = vsel %vm904_vm1, %v903_v35, 0.0  ;;  %v913_v53 = vadd.f32 %v902_v40, %v896_v23  ;;  %1586 = vrcp.f32 %v2149_v49 }
 0x3f0   : > { %v912_v55 = vadd.f32 %v910_v52, %v895_v46 }
 0x3f1   : > { %916 = vrot.lane.b32.xlu1 %v913_v53, %s1684_s29 }
 0x3f2   : > { %914 = vrot.lane.b32.xlu0 %v912_v55, %s1684_s29  ;;  %s1468_s29 = sshll.u32 %s408_s23, 3 }
 0x3f3   : > { %s410_s0 = scalar_lea.vmem [#allocation4], %s1468_s29  ;;  %s1626_s29 = scalar_lea.hbm %s2473_s10, 16 }
 0x3f4   : > { %s1294_s15 = sshll.u32 %s410_s0, 4  ;;  %s1295_s15 = int_to_ptr.vmem [resolvable:$true] %s1294_s15 }
 0x463   : > { %v917_v22 = vpop.permute.xlu1 %916 }
 0x464   : > { %v915_v47 = vpop.permute.xlu0 %914 }
 0x465   : > { %v919_v58 = vsel %vm918_vm3, %v915_v47, %v917_v22  ;;  %v920_v59 = vsel %vm918_vm3, %v917_v22, %v915_v47  ;;  %v2177_v47 = vpop.eup %1582 }
 0x466   : > { %v927_v61 = vsel %vm921_vm4, %v920_v59, 0.0  ;;  %v930_v62 = vadd.f32 %v919_v58, %v913_v53  ;;  %vm1004_vm4 = vcmp.eq.s32.totalorder %v2020_v2, 1 }
 0x467   : > { %v929_v21 = vadd.f32 %v927_v61, %v912_v55 }
 0x468   : > { %933 = vrot.lane.b32.xlu0 %v930_v62, %s1685_s24 }
 0x469   : > { %931 = vrot.lane.b32.xlu2 %v929_v21, %s1685_s24 }
 0x471   : > { %1063 = vperm.xlu2 %1568, %v1002_v27  }
 0x479   : > { %1570 = vset.pattern.permute.xlu2 %v1687_v9 }
 0x47a   : > { %1095 = vperm.xlu2 %1570, %v1002_v27  }
 0x4c3   : > { %v932_v50 = vpop.permute.xlu2 %931 }
 0x4da   : > { %v934_v57 = vpop.permute.xlu0 %933 }
 0x4db   : > { %v936_v63 = vsel %vm935_vm9, %v932_v50, %v934_v57  ;;  %v937_v0 = vsel %vm935_vm9, %v934_v57, %v932_v50  ;;  %vm1020_vm9 = vcmp.eq.s32.totalorder %v2016_v44, 2 }
 0x4dc   : > { %v944_v6 = vsel %vm938_vm8, %v937_v0, 0.0  ;;  %v947_v7 = vadd.f32 %v936_v63, %v930_v62 }
 0x4dd   : > { %v946_v8 = vadd.f32 %v944_v6, %v929_v21  ;;  %v1064_v21 = vpop.permute.xlu2 %1063 }
 0x4de   : > { %950 = vrot.lane.b32.xlu0 %v947_v7, %s1686_s16 }
 0x4df   : > { %948 = vrot.lane.b32.xlu1 %v946_v8, %s1686_s16  ;;  %s1296_s16 = sshll.u32 %s1292_s11, 4  ;;  %s1297_s16 = int_to_ptr.hbm [resolvable:$true] %s1296_s16 }
 0x4e0   : > { %s1620_s21 = sshra.s32 %s1297_s16, 4  ;;  %s1621_s21 = int_to_ptr.hbm [resolvable:$true] %s1620_s21 }
 0x4e1   : > { %p1627_p0 = scmp.lt.s32.totalorder %s1621_s21, %s2473_s10 }
 0x4e6   : > { %1031 = vperm.xlu0 %1566, %v1002_v27  }
 0x4e7   : > { %1015 = vperm.xlu1 %1560, %v1002_v27  }
 0x4ee   : > { %1571 = vset.pattern.permute.xlu0 %v1688_v10 }
 0x4ef   : > { %1567 = vset.pattern.permute.xlu1 %v1674_v1  ;;  %1111 = vperm.xlu0 %1571, %v1002_v27  }
 0x4f0   : > { %1047 = vperm.xlu1 %1567, %v1002_v27  }
 0x4f7   : > { %1573 = vset.pattern.permute.xlu0 %v1689_v11 }
 0x4f8   : > { %1569 = vset.pattern.permute.xlu1 %v1690_v12  ;;  %v1174_v12 = vand.u32 2147483647, %v2102_v19 }
 0x4f9   : > { %1079 = vperm.xlu1 %1569, %v1002_v27  }
 0x501   : > { %1572 = vset.pattern.permute.xlu1 %v1689_v11 }
 0x502   : > { %1127 = vperm.xlu1 %1572, %v1002_v27  }
 0x550   : > { %v951_v1 = vpop.permute.xlu0 %950 }
 0x551   : > { %v949_v32 = vpop.permute.xlu1 %948 }
 0x552   : > { %v953_v16 = vsel %vm952_vm10, %v949_v32, %v951_v1  ;;  %v954_v15 = vsel %vm952_vm10, %v951_v1, %v949_v32  ;;  %vm1021_vm10 = vcmp.eq.s32.totalorder %v2020_v2, 2  ;;  %v2233_v1 = vmul.f32 %v2177_v47, %v2102_v19 }
 0x553   : > { %v961_v34 = vsel %vm955_vm11, %v954_v15, 0.0  ;;  %v964_v33 = vadd.f32 %v953_v16, %v947_v7 }
 0x554   : > { %v2089_v36 = vadd.f32 %v961_v34, %v946_v8  ;;  %v2214_v8 = vpop.eup %1584 }
 0x555   : > { %v2235_v30 = vpop.eup %1586 }
 0x556   : > { %v2092_v26 = vadd.f32 %v964_v33, %v2089_v36  ;;  %vm975_vm12 = vcmp.le.f32.partialorder %v2089_v36, 128.0 }
 0x557   : > { %vm2097_vm13 = vmand %vm2025_vm2, %vm975_vm12 }
 0x558   : > { %vm976_vm1 = vcmp.le.f32.partialorder %v2092_v26, 128.0  ;;  %vm1005_vm3 = vmand %vm2097_vm13, %vm1003_vm0  ;;  %v2110_v37 = vsel %vm2097_vm13, 1.0, %v1680_v5  ;;  %vm1037_vm0 = vcmp.eq.s32.totalorder %v2020_v2, 3  ;;  %v1032_v7 = vpop.permute.xlu0 %1031 }
 0x559   : > { %vm2114_vm2 = vmand %vm2030_vm5, %vm976_vm1  ;;  %v2119_v29 = vpop.permute.xlu1 %1015  ;;  %v1007_v38 = vsel %vm1005_vm3, 1, %v1676_v3  ;;  %vm1036_vm5 = vcmp.eq.s32.totalorder %v2016_v44, 3  ;;  %v983_v42 = vsel %vm2475_vm15, %v2110_v37, 0.0 }
 0x55a   : > { %vm1006_vm8 = vmand %vm2114_vm2, %vm1004_vm4  ;;  %v2129_v54 = vsel %vm2114_vm2, 1.0, %v1680_v5  ;;  %v1009_v43 = vperm.slane %v1007_v38, 0  ;;  %vm1052_vm4 = vcmp.eq.s32.totalorder %v2016_v44, 4 }
 0x55b   : > { %v1008_v41 = vsel %vm1006_vm8, 1, %v1676_v3  ;;  %vm1022_vm11 = vmand %vm2097_vm13, %vm1020_vm9  ;;  %v984_v60 = vsel %vm2475_vm15, %v2129_v54, 0.0  ;;  %vm1053_vm9 = vcmp.eq.s32.totalorder %v2020_v2, 4  ;;  %vm1068_vm8 = vcmp.eq.s32.totalorder %v2016_v44, 5 }
 0x55c   : > { %v1010_v45 = vperm.slane %v1008_v41, 0  ;;  %vm1023_vm12 = vmand %vm2114_vm2, %vm1021_vm10  ;;  %v1024_v18 = vsel %vm1022_vm11, 1, %v1676_v3  ;;  %v985_v23 = vadd.f32 %v984_v60, %v983_v42 }
 0x55d   : > { %v1025_v46 = vsel %vm1023_vm12, 1, %v1676_v3  ;;  %vm1038_vm1 = vmand %vm2097_vm13, %vm1036_vm5  ;;  %v1026_v51 = vperm.slane %v1024_v18, 0  ;;  %vm2165_vm5 = vcmp.eq.s32.totalorder %v1009_v43, 1  ;;  %v2270_v43 = vmul.f32 %v2214_v8, %v2132_v39 }
 0x55e   : > { %986 = vadd.xlane.f32.xlu2 %v985_v23  ;;  %vm1039_vm3 = vmand %vm2114_vm2, %vm1037_vm0  ;;  %v1027_v40 = vperm.slane %v1025_v46, 0  ;;  %v1040_v35 = vsel %vm1038_vm1, 1, %v1676_v3  ;;  %vm2169_vm11 = vcmp.eq.s32.totalorder %v1010_v45, 1  ;;  %vm1069_vm0 = vcmp.eq.s32.totalorder %v2020_v2, 5 }
 0x55f   : > { %v1041_v52 = vsel %vm1039_vm3, 1, %v1676_v3  ;;  %vm2161_vm10 = vmand %vm2097_vm13, %vm1052_vm4  ;;  %vm1084_vm3 = vcmp.eq.s32.totalorder %v2016_v44, 6  ;;  %vm1085_vm4 = vcmp.eq.s32.totalorder %v2020_v2, 6  ;;  %v1042_v61 = vperm.slane %v1040_v35, 0 }
 0x560   : > { %vm1055_vm12 = vmand %vm2114_vm2, %vm1053_vm9  ;;  %v1043_v62 = vperm.slane %v1041_v52, 0  ;;  %v1056_v27 = vsel %vm2161_vm10, 1, %v1676_v3  ;;  %v1018_v57 = vsel %vm2165_vm5, %v2119_v29, 0.0  ;;  %v1019_v63 = vsel %vm2169_vm11, %v2119_v29, 0.0 }
 0x561   : > { %vm2181_vm1 = vmand %vm2097_vm13, %vm1068_vm8  ;;  %v1057_v50 = vsel %vm1055_vm12, 1, %v1676_v3  ;;  %vm2201_vm15 = vcmp.eq.s32.totalorder %v1026_v51, 1  ;;  %vm2205_vm9 = vcmp.eq.s32.totalorder %v1027_v40, 1  ;;  %vm1116_vm5 = vcmp.eq.s32.totalorder %v2016_v44, 8 }
 0x562   : > { %v1048_v59 = vpop.permute.xlu1 %1047  ;;  %vm1071_vm8 = vmand %vm2114_vm2, %vm1069_vm0  ;;  %v1072_v9 = vsel %vm2181_vm1, 1, %v1676_v3  ;;  %vm1117_vm12 = vcmp.eq.s32.totalorder %v2020_v2, 8  ;;  %v1058_v13 = vperm.slane %v1056_v27, 0  ;;  %v1059_v14 = vperm.slane %v1057_v50, 0  ;;  %v1096_v27 = vpop.permute.xlu2 %1095 }
 0x563   : > { %vm1086_vm10 = vmand %vm2097_vm13, %vm1084_vm3  ;;  %v1073_v10 = vsel %vm1071_vm8, 1, %v1676_v3  ;;  %v1034_v31 = vsel %vm2201_vm15, %v1032_v7, %v1018_v57  ;;  %v1035_v32 = vsel %vm2205_vm9, %v1032_v7, %v1019_v63  ;;  %vm2241_vm0 = vcmp.eq.s32.totalorder %v1042_v61, 1  ;;  %v2276_v23 = vld.sshfl [vmem:[#allocation1 + $0x8] sm:$0xff pattern:$0x75316420]  ;;  %v1112_v7 = vpop.permute.xlu0 %1111 }
 0x564   : > { %vm2224_vm11 = vmand %vm2114_vm2, %vm1085_vm4  ;;  %v1088_v20 = vsel %vm1086_vm10, 1, %v1676_v3  ;;  %vm2245_vm1 = vcmp.eq.s32.totalorder %v1043_v62, 1  ;;  %v1050_v33 = vsel %vm2241_vm0, %v1048_v59, %v1034_v31  ;;  %v1074_v29 = vperm.slane %v1072_v9, 0 }
 0x565   : > { %vm2253_vm3 = vmand %vm2097_vm13, %vm1100_vm14  ;;  %v1075_v38 = vperm.slane %v1073_v10, 0  ;;  %v1089_v41 = vsel %vm2224_vm11, 1, %v1676_v3  ;;  %vm2514_vm15 = vcmp.eq.s32.totalorder %v2020_v2, 7  ;;  %v1051_v42 = vsel %vm2245_vm1, %v1048_v59, %v1035_v32 }
 0x566   : > { %vm1103_vm4 = vmand %vm2114_vm2, %vm2514_vm15  ;;  %v1090_v60 = vperm.slane %v1088_v20, 0  ;;  %v979_v45 = vsel %vm2097_vm13, 1, %v1676_v3  ;;  %vm1060_vm14 = vcmp.eq.s32.totalorder %v1058_v13, 1  ;;  %vm1061_vm9 = vcmp.eq.s32.totalorder %v1059_v14, 1 }
 0x567   : > { %v1167_v18 = vsub.f32 1.0, %v2233_v1  ;;  %v1201_v46 = vmul.f32 %v2235_v30, %v2149_v49  ;;  %v1066_v51 = vsel %vm1060_vm14, %v1064_v21, %v1050_v33  ;;  %v1091_v40 = vperm.slane %v1089_v41, 0  ;;  %vm1118_vm1 = vmand %vm2097_vm13, %vm1116_vm5 }
 0x568   : > { %v1104_v35 = vsel %vm2253_vm3, 1, %v1676_v3  ;;  %v1105_v52 = vsel %vm1103_vm4, 1, %v1676_v3  ;;  %vm2285_vm8 = vcmp.lt.s32.totalorder %v742_v24, 256  ;;  %v1067_v55 = vsel %vm1061_vm9, %v1064_v21, %v1051_v42  ;;  %vm1119_vm3 = vmand %vm2114_vm2, %vm1117_vm12 }
 0x569   : > { %vm2289_vm10 = vcmp.eq.s32.totalorder %v1074_v29, 1  ;;  %vm2293_vm11 = vcmp.eq.s32.totalorder %v1075_v38, 1  ;;  %v1202_v61 = vsub.f32 1.0, %v1201_v46  ;;  %vm1092_vm0 = vcmp.eq.s32.totalorder %v1090_v60, 1 }
 0x56a   : > { %1588 = vrcp.f32 %v2276_v23  ;;  %v1106_v21 = vperm.slane %v1104_v35, 0  ;;  %v1107_v50 = vperm.slane %v1105_v52, 0  ;;  %v1209_v63 = vand.u32 2147483647, %v2149_v49 }
 0x56b   : > { %v1080_v22 = vpop.permute.xlu1 %1079  ;;  %v1203_v57 = vmul.f32 %v2235_v30, %v1202_v61  ;;  %vm1093_vm15 = vcmp.eq.s32.totalorder %v1091_v40, 1  ;;  %vm1205_vm4 = vweird.f32 %v2149_v49  ;;  %vm1206_vm14 = vweird.f32 %v2235_v30 }
 0x56c   : > { %v1082_v62 = vsel %vm2289_vm10, %v1080_v22, %v1066_v51  ;;  %v1083_v24 = vsel %vm2293_vm11, %v1080_v22, %v1067_v55  ;;  %v1211_v44 = vand.u32 2147483648, %v2149_v49  ;;  %v1182_v9 = vsub.f32 1.0, %v2270_v43  ;;  %vm2333_vm10 = vmor %vm1205_vm4, %vm1206_vm14 }
 0x56d   : > { %v1098_v0 = vsel %vm1092_vm0, %v1096_v27, %v1082_v62  ;;  %v1099_v6 = vsel %vm1093_vm15, %v1096_v27, %v1083_v24  ;;  %v1120_v10 = vsel %vm1118_vm1, 1, %v1676_v3  ;;  %v1204_v2 = vadd.f32 %v2235_v30, %v1203_v57 }
 0x56e   : > { %v1121_v11 = vsel %vm1119_vm3, 1, %v1676_v3  ;;  %v1122_v13 = vperm.slane %v1120_v10, 0  ;;  %v980_v14 = vsel %vm2114_vm2, 1, %v1676_v3  ;;  %vm2322_vm5 = vcmp.eq.s32.totalorder %v1106_v21, 1 }
 0x56f   : > { %vm2326_vm12 = vcmp.eq.s32.totalorder %v1107_v50, 1  ;;  %vm1170_vm9 = vweird.f32 %v2102_v19  ;;  %vm2337_vm11 = vcmp.eq.f32.partialorder %v1209_v63, 8.507059e+37  ;;  %v1123_v15 = vperm.slane %v1121_v11, 0 }
 0x570   : > { %v1589_v34 = vpop.eup %1588  ;;  %v1114_v33 = vsel %vm2322_vm5, %v1112_v7, %v1098_v0  ;;  %v1115_v29 = vsel %vm2326_vm12, %v1112_v7, %v1099_v6  ;;  %v1212_v38 = vor.u32 1.1754944e-38, %v1211_v44  ;;  %v1237_v49 = vrot.slane %v980_v14, 7 }
 0x571   : > { %v1216_v41 = vmul.f32 %v1589_v34, %v2276_v23  ;;  %vm1220_vm0 = vweird.f32 %v2276_v23  ;;  %v1224_v42 = vand.u32 2147483647, %v2276_v23  ;;  %v1226_v60 = vand.u32 2147483648, %v2276_v23 }
 0x572   : > { %v1208_v43 = vsel %vm2333_vm10, %v2235_v30, %v1204_v2  ;;  %vm1124_vm1 = vcmp.eq.s32.totalorder %v1122_v13, 1  ;;  %vm1125_vm3 = vcmp.eq.s32.totalorder %v1123_v15, 1  ;;  %vm2529_vm15 = vcmask 1040384  }
 0x573   : > { %v1238_v51 = vsel %vm2529_vm15, %v979_v45, %v1237_v49  ;;  %v1217_v40 = vsub.f32 1.0, %v1216_v41  ;;  %vm1221_vm4 = vweird.f32 %v1589_v34  ;;  %v1168_v30 = vmul.f32 %v2177_v47, %v1167_v18 }
 0x574   : > { %v1128_v46 = vpop.permute.xlu1 %1127  ;;  %1243 = vst.msk [vmem:[%s438_s28] sm:$0x3] %vm2285_vm8, %v1238_v51  ;;  %vm1171_vm14 = vweird.f32 %v2177_v47  ;;  %vm1185_vm5 = vweird.f32 %v2132_v39  ;;  %v1183_v61 = vmul.f32 %v2214_v8, %v1182_v9  ;;  %vm2367_vm12 = vmor %vm1220_vm0, %vm1221_vm4  ;;  %v1227_v24 = vor.u32 1.1754944e-38, %v1226_v60  ;;  %s1622_s28 = scalar_lea.hbm %s1621_s21, 8 }
 0x575   : > { %v1130_v35 = vsel %vm1124_vm1, %v1128_v46, %v1114_v33  ;;  %v1131_v52 = vsel %vm1125_vm3, %v1128_v46, %v1115_v29  ;;  %v1218_v45 = vmul.f32 %v1589_v34, %v1217_v40  ;;  %vm1186_vm10 = vweird.f32 %v2214_v8  ;;  %p1623_p11 = scmp.ne.s32.totalorder %s1621_s21, %s1622_s28  ;;  %p1628_p1 = scmp.lt.s32.totalorder %s1626_s29, %s1622_s28 }
 0x576   : > { %v1134_v55 = vrot.slane %v1130_v35, 2  ;;  %v1135_v22 = vrot.slane %v1131_v52, 2  ;;  %v1142_v58 = vrot.slane %v1130_v35, 6  ;;  %v1143_v59 = vrot.slane %v1131_v52, 6  ;;  %vm2393_vm0 = vmor %vm1185_vm5, %vm1186_vm10 }
 0x577   : > { %v1213_v1 = vsel %vm2337_vm11, %v1212_v38, %v1208_v43  ;;  %v1219_v18 = vadd.f32 %v1589_v34, %v1218_v45  ;;  %vm1225_vm1 = vcmp.eq.f32.partialorder %v1224_v42, 8.507059e+37  ;;  %v1176_v23 = vand.u32 2147483648, %v2102_v19  ;;  %vm2384_vm11 = vmor %vm1170_vm9, %vm1171_vm14  ;;  %p1624_p12 = pnand %p1623_p11, %p1787_p5  ;;  %p1629_p2 = por %p1628_p1, %p1627_p0 }
 0x578   : > { %v1146_v27 = vsub.f32 %v1130_v35, %v1142_v58  ;;  %v1147_v21 = vsub.f32 %v1131_v52, %v1143_v59  ;;  %v1138_v50 = vadd.f32 %v1134_v55, %v1130_v35  ;;  %v1139_v57 = vadd.f32 %v1135_v22, %v1131_v52 }
 0x579   : > { %v1189_v0 = vand.u32 2147483647, %v2132_v39  ;;  %v1191_v6 = vand.u32 2147483648, %v2132_v39  ;;  %v1223_v7 = vsel %vm2367_vm12, %v1589_v34, %v1219_v18  ;;  %v1169_v9 = vadd.f32 %v2177_v47, %v1168_v30  ;;  %p1625_p13 = pneg %p1624_p12 }
 0x57a   : > { %v1148_v63 = vadd.f32 1.0, %v1146_v27  ;;  %v1149_v44 = vadd.f32 1.0, %v1147_v21  ;;  %v1184_v2 = vadd.f32 %v2214_v8, %v1183_v61  ;;  %v1228_v11 = vsel %vm1225_vm1, %v1227_v24, %v1223_v7 }
 0x57b   : > { %v1140_v31 = vmul.f32 0.5, %v1138_v50  ;;  %v1141_v32 = vmul.f32 0.5, %v1139_v57  ;;  %v1177_v16 = vor.u32 1.1754944e-38, %v1176_v23  ;;  %v1192_v15 = vor.u32 1.1754944e-38, %v1191_v6  ;;  %p1630_p3 = pnand %p1629_p2, %p1625_p13 }
 0x57c   : > { %v1214_v13 = vmul.f32 %v1213_v1, %v1148_v63  ;;  %v1229_v20 = vmul.f32 %v1228_v11, %v1149_v44  ;;  %v1173_v34 = vsel %vm2384_vm11, %v2177_v47, %v1169_v9  ;;  %vm1175_vm9 = vcmp.eq.f32.partialorder %v1174_v12, 8.507059e+37 }
 0x57d   : > { %v1188_v39 = vsel %vm2393_vm0, %v2214_v8, %v1184_v2  ;;  %vm1190_vm3 = vcmp.eq.f32.partialorder %v1189_v0, 8.507059e+37  ;;  %v1156_v33 = vsub.f32 %v1140_v31, %v2081_v25  ;;  %v1157_v29 = vsub.f32 %v1141_v32, %v2083_v28 }
 0x57e   : > { %1590 = vlog2.f32 %v1214_v13  ;;  %v1178_v38 = vsel %vm1175_vm9, %v1177_v16, %v1173_v34  ;;  %v1193_v49 = vsel %vm1190_vm3, %v1192_v15, %v1188_v39  ;;  %vm1234_vm15 = vcmask 1041408  }
 0x57f   : > { %1592 = vlog2.f32 %v1229_v20  ;;  %v1179_v19 = vmul.f32 %v1178_v38, %v1156_v33  ;;  %v1194_v47 = vmul.f32 %v1193_v49, %v1157_v29  ;;  %v1257_v25 = vperm.slane %v2129_v54, 0 }
 0x580   : > { %v1256_v43 = vperm.slane %v2110_v37, 0  ;;  %vm2536_vm4 = vcmask 1043456  }
 0x584   : > { %v1591_v41 = vpop.eup %1590 }
 0x585   : > { %v1593_v42 = vpop.eup %1592  ;;  %v1231_v60 = vmul.f32 0.6931472, %v1591_v41 }
 0x586   : > { %v1233_v12 = vmul.f32 0.6931472, %v1593_v42 }
 0x587   : > { %v1235_v8 = vsel %vm1234_vm15, %v1179_v19, %v1231_v60 }
 0x588   : > { %v1236_v28 = vsel %vm1234_vm15, %v1194_v47, %v1233_v12  ;;  %v1258_v51 = vmul.f32 %v1256_v43, %v1235_v8 }
 0x589   : > { %v1259_v46 = vmul.f32 %v1257_v25, %v1236_v28 }
 0x58b   : > { %v1262_v40 = vrot.slane %v1259_v46, 4 }
 0x58d   : > { %v1263_v35 = vsel %vm2536_vm4, %v1258_v51, %v1262_v40 }
 0x58e   : > { %1265 = vst [vmem:[%s410_s0] sm:$0xff] %v1263_v35 }
 0x58f   : > { %1633 = shalt.err (!%p1630_p3)
}
 0x590   : > { %1493 = dma.vmem_to_hbm [thread:$0]  (%p1787_p5), %s1295_s15, 128, %s1297_s16, %s1275_s14   ;;  %vm2537_vm3 = vcmask 1040384  }
 0x591   : > { %s442_s0 = scalar_lea.vmem %s2472_s9, %s1965_s12 }
 0x5d1   : > { %v987_v37 = vpop.xlane.xlu2 %986 }
 0x5d2   : > { %v988_v54 = vsub.f32 256.0, %v987_v37 }
 0x5d4   : > { %v990_v52 = vrot.slane %v988_v54, 7 }
 0x5d6   : > { %vm992_vm14 = vcmp.le.f32.partialorder %v2089_v36, %v990_v52  ;;  %vm993_vm5 = vcmp.le.f32.partialorder %v2092_v26, %v990_v52 }
 0x5d7   : > { %v994_v55 = vsel %vm992_vm14, 1, %v1676_v3  ;;  %v995_v22 = vsel %vm993_vm5, 1, %v1676_v3 }
 0x5d8   : > { %v996_v58 = vrot.slane %v994_v55, 1  ;;  %v997_v59 = vrot.slane %v995_v22, 1 }
 0x5da   : > { %vm998_vm12 = vcmp.ne.s32.totalorder %v996_v58, 0  ;;  %vm999_vm10 = vcmp.ne.s32.totalorder %v997_v59, 0 }
 0x5db   : > { %vm1000_vm1 = vmand %vm2034_vm6, %vm998_vm12 }
 0x5dc   : > { %vm1001_vm11 = vmand %vm2038_vm7, %vm999_vm10 }
 0x5dd   : > { %vm1244_vm0 = vmor %vm2097_vm13, %vm1000_vm1 }
 0x5de   : > { %vm1245_vm9 = vmor %vm2114_vm2, %vm1001_vm11  ;;  %v1485_v26 = vsel %vm1244_vm0, 1.0, %v1680_v5 }
 0x5df   : > { %v1486_v36 = vsel %vm1245_vm9, 1.0, %v1680_v5 }
 0x5e0   : > { %v1252_v3 = vrot.slane %v1486_v36, 7 }
 0x5e2   : > { %v1253_v48 = vsel %vm2537_vm3, %v1485_v26, %v1252_v3 }
 0x5e3   : > { %1255 = vst.msk [vmem:[%s442_s0] sm:$0x3] %vm2285_vm8, %v1253_v48 }
 0x5e4 PF: > { %p1499_p4 = scmp.ge.s32.totalorder %s1670_s20, 2  ;;  %s1322_s15 = sand.u32 1, %s1658_s17  }
 0x5e5   : > { %s1323_s16 = scalar_lea.sflag [#allocation5], %s1322_s15 }
 0x5e6   : > { %p1496_p5 = pnand %p1499_p4, %p1791_p6 }
 0x5e8   : > { %p1497_p7 = pneg %p1496_p5 }
 0x5ea   : > { %1653 = dma.done.wait (%p1497_p7), %s1323_s16, 128  }
 0x5eb   : > { %1655 = vsyncadd (%p1497_p7), %s1323_s16, 4294967168  ;;  %p29_p8 = scmp.ge.s32.totalorder %s1774_s22, 4   ;;  %s2538_s17 = smov %s1662_s18 }
 0x5ec   : > { %s2539_s18 = smov %s1666_s19  ;;  %s2540_s19 = smov %s1785_s25 }
 0x5ed   : > { %s2541_s20 = smov %s1774_s22  ;;  %31 = sbr.rel (!%p29_p8) target bundleno = 9 (0x9), region = 125 }
 0x5f2   :  { %1329 = vsyncpa [#allocation5], 1 }
 0x5f3   :  { %1331 = vsyncpa [#allocation5 + $0x1], 1 }

</bundles_post_ra>
